<compile_context>
chip_gen: v7x
topology: tpu7x:2x2x1
jax: 0.10.0
libtpu: 0.0.40
codegen_flags: <defaults>
</compile_context>

<pallas_src>
import math

import jax
import jax.numpy as jnp
from jax.experimental import pallas as pl
from jax.experimental.pallas import tpu as pltpu

EPS = 1e-5  # nn.LayerNorm default


# ---------------------------------------------------------------- helpers ----
def timing_signal(L, D, min_ts=1.0, max_ts=10000.0):
    """Same as get_timing_signal, returns (L, D) float32."""
    position = jnp.arange(L, dtype=jnp.float32)
    nt = D // 2
    log_inc = math.log(float(max_ts) / float(min_ts)) / (float(nt) - 1.0)
    inv = min_ts * jnp.exp(jnp.arange(nt, dtype=jnp.float32) * -log_inc)
    st = position[:, None] * inv[None, :]
    sig = jnp.concatenate([jnp.sin(st), jnp.cos(st)], axis=1)
    if D % 2:
        sig = jnp.pad(sig, ((0, 0), (0, 1)))
    return sig.astype(jnp.float32)


def _rep2(shape):
    return pl.BlockSpec(shape, lambda b: (0, 0))


def _rep3(shape):
    return pl.BlockSpec(shape, lambda b: (0, 0, 0))


# ----------------------------------------------------------------- kernel ----
def _make_fused_kernel(*, L, Lp, D, K, H, NC):
    pad = K // 2
    dh = D // H
    bf16 = jnp.bfloat16
    f32 = jnp.float32

    def _ln(x, g, b):
        # LayerNorm over the channel (sublane) axis.  x: (D, Lp); g, b: (D, 1).
        mu = jnp.mean(x, axis=0, keepdims=True)
        var = jnp.mean(jnp.square(x - mu), axis=0, keepdims=True)
        return (x - mu) * jax.lax.rsqrt(var + EPS) * g + b

    def kernel(x_ref, m_ref, sig_ref,
               cg_ref, cb_ref, dw_ref, pw_ref, pb_ref,
               g2_ref, bt2_ref, wqkv_ref,
               g3_ref, bt3_ref, w1_ref, b1_ref, w2_ref, b2_ref,
               o_ref, qkv_ref, resacc_ref):
        # Columns >= L are lane padding.  They must be zero going into the
        # depthwise conv so the rolled taps see the same zero boundary as the
        # PyTorch Conv1d padding.
        col = jax.lax.broadcasted_iota(jnp.int32, (1, Lp), 1)
        valid = (col < L).astype(f32)                       # (1, Lp)

        # ---- positional encoding (padded sig columns are zero) ----
        out = x_ref[0] + sig_ref[...]                       # (D, Lp) f32

        # ---- depthwise-separable conv blocks (stacked weights, unrolled) ----
        for c in range(NC):
            res = out
            h = _ln(out, cg_ref[c], cb_ref[c]) * valid      # zero padded cols
            dwc = dw_ref[c]                                 # (D, K) f32
            acc = h * dwc[:, pad:pad + 1]                   # center tap (no roll)
            for j in range(K):
                if j == pad:
                    continue
                # tap j reads h[:, i + j - pad]; lane rotation runs on the XLU.
                # Lp - L >= pad guarantees every wrapped lane lands in the
                # zeroed padding, so no extra boundary masking is needed.
                acc = acc + pltpu.roll(h, (pad - j) % Lp, 1) * dwc[:, j:j + 1]
            # pointwise 1x1 conv == channel GEMM (bf16 MXU, f32 accum) + bias + relu
            y = jnp.dot(pw_ref[c], acc.astype(bf16),
                        preferred_element_type=f32) + pb_ref[c]
            out = res + jnp.maximum(y, 0.0)                 # eval layer_dropout

        # ---- self-attention ----
        resacc_ref[...] = out                               # stash residual in VMEM
        h = _ln(out, g2_ref[...], bt2_ref[...])
        # fused Q|K|V projection: one (3D, D) GEMM.  1/sqrt(dh) is pre-folded
        # into the Q rows of wqkv, so no per-head scale multiply is needed.
        qkv_ref[...] = jnp.dot(wqkv_ref[...], h.astype(bf16),
                               preferred_element_type=f32)  # (3D, Lp) f32
        keep = m_ref[0]                                     # (1, Lp) key mask, f32
        neg = (1.0 - keep) * (-1e30)                        # hoisted out of head loop

        def head_body(hd, carry):
            base = hd * dh
            if dh % 8 == 0:                                 # sublane-aligned hint
                base = pl.multiple_of(base, 8)
            qs = qkv_ref[pl.ds(base, dh), :]                # (dh, Lq)
            ks = qkv_ref[pl.ds(D + base, dh), :]            # (dh, Lk)
            vs = qkv_ref[pl.ds(2 * D + base, dh), :]        # (dh, Lk)
            # logits[q, k] = sum_d qs[d, q] * ks[d, k]   (bf16 MXU, f32 accum)
            logits = jax.lax.dot_general(
                qs.astype(bf16), ks.astype(bf16),
                (((0,), (0,)), ((), ())), preferred_element_type=f32)  # (Lq, Lk)
            logits = logits * keep + neg                    # mask_logits, f32
            mrow = jnp.max(logits, axis=-1, keepdims=True)
            p = jnp.exp(logits - mrow)
            alpha = p * pl.reciprocal(jnp.sum(p, axis=-1, keepdims=True),
                                      approx=True)
            # attn_h[d, q] = sum_k vs[d, k] * alpha[q, k]
            head = jax.lax.dot_general(
                vs.astype(bf16), alpha.astype(bf16),
                (((1,), (1,)), ((), ())), preferred_element_type=f32)  # (dh, Lq)
            # fuse the residual add into the per-head writeback (in-place).
            resacc_ref[pl.ds(base, dh), :] = (
                resacc_ref[pl.ds(base, dh), :] + head)
            return carry

        jax.lax.fori_loop(0, H, head_body, 0)
        out = resacc_ref[...]                               # residual already added

        # ---- feed-forward ----
        res = out
        h = _ln(out, g3_ref[...], bt3_ref[...])
        h = jnp.maximum(jnp.dot(w1_ref[...], h.astype(bf16),
                                preferred_element_type=f32) + b1_ref[...], 0.0)
        h = jnp.dot(w2_ref[...], h.astype(bf16),
                    preferred_element_type=f32) + b2_ref[...]
        o_ref[0] = res + h                                  # (D, Lp), NCL output

    return kernel


# ---------------------------------------------------------------- wrapper ----
def qanet_encoder_block(x_bdl, mask_bl, params, l=1, blks=1, *, kernel_size=7,
                        num_heads=1):
    """x_bdl: (B, D, L) float32 (torch NCL). mask_bl: (B, L) 0/1.
    Returns (B, D, L) float32."""
    del l, blks  # only used by training-mode layer_dropout (eval: inputs + residual)
    B, D, L = x_bdl.shape
    K = kernel_size
    pad = K // 2
    H = num_heads
    NC = params["conv_dw"].shape[0]

    # Lane-dense padded length: multiple of 128, with >= pad slack so the
    # depthwise-conv roll wrap-around always lands in zeroed padding columns.
    Lp = ((L + 127) // 128) * 128
    if Lp - L < pad:
        Lp += 128

    x = jnp.pad(x_bdl.astype(jnp.float32), ((0, 0), (0, 0), (0, Lp - L)))
    mask = jnp.pad(mask_bl.astype(jnp.float32), ((0, 0), (0, Lp - L)))
    mask = mask.reshape(B, 1, Lp)                            # padded keys -> masked
    sig = jnp.pad(jnp.transpose(timing_signal(L, D), (1, 0)),
                  ((0, 0), (0, Lp - L)))                     # (D, Lp), NCL layout

    kernel = _make_fused_kernel(L=L, Lp=Lp, D=D, K=K, H=H, NC=NC)

    in_specs = [
        pl.BlockSpec((1, D, Lp), lambda b: (b, 0, 0)),      # x          (B, D, Lp)
        pl.BlockSpec((1, 1, Lp), lambda b: (b, 0, 0)),      # mask       (B, 1, Lp)
        _rep2((D, Lp)),                                     # timing signal
        _rep3((NC, D, 1)),                                  # conv LN gamma
        _rep3((NC, D, 1)),                                  # conv LN beta
        _rep3((NC, D, K)),                                  # depthwise weights
        _rep3((NC, D, D)),                                  # pointwise weights (bf16)
        _rep3((NC, D, 1)),                                  # pointwise bias
        _rep2((D, 1)), _rep2((D, 1)),                       # ln2 gamma / beta
        _rep2((3 * D, D)),                                  # fused Wq|Wk|Wv (bf16)
        _rep2((D, 1)), _rep2((D, 1)),                       # ln3 gamma / beta
        _rep2((D, D)), _rep2((D, 1)),                       # ff1 weight (bf16) / bias
        _rep2((D, D)), _rep2((D, 1)),                       # ff2 weight (bf16) / bias
    ]
    out_specs = pl.BlockSpec((1, D, Lp), lambda b: (b, 0, 0))

    # Advisory cost estimate so XLA schedules neighbouring ops sensibly.
    gemm_flops = 2 * D * D * Lp * (NC + 3 + 2)              # pw convs + QKV + ff1 + ff2
    attn_flops = 4 * D * Lp * Lp                            # logits + alpha@V (all heads)
    dw_flops = 2 * NC * D * K * Lp
    ln_flops = (NC + 2) * 8 * D * Lp
    flops = B * (gemm_flops + attn_flops + dw_flops + ln_flops)
    transcendentals = B * (H * Lp * Lp + (NC + 2) * Lp)
    w_bytes = int(sum(int(v.size) * v.dtype.itemsize for v in params.values()))
    bytes_accessed = B * (3 * D * Lp * 4 + Lp * 4) + w_bytes
    cost = pl.CostEstimate(flops=int(flops),
                           transcendentals=int(transcendentals),
                           bytes_accessed=int(bytes_accessed))

    out = pl.pallas_call(
        kernel,
        out_shape=jax.ShapeDtypeStruct((B, D, Lp), jnp.float32),
        grid_spec=pltpu.PrefetchScalarGridSpec(
            num_scalar_prefetch=0, grid=(B,),
            in_specs=in_specs, out_specs=out_specs,
            scratch_shapes=[
                pltpu.VMEM((3 * D, Lp), jnp.float32),       # fused Q|K|V scratch
                pltpu.VMEM((D, Lp), jnp.float32),           # residual + attn accumulator
            ]),
        compiler_params=pltpu.CompilerParams(
            dimension_semantics=("parallel",),              # batch -> megacore/2-TC
            vmem_limit_bytes=32 * 1024 * 1024),             # safe on v5e/v6e/v7x
        cost_estimate=cost,
    )(x, mask, sig,
      params["conv_ln_g"], params["conv_ln_b"], params["conv_dw"],
      params["conv_pw"], params["conv_pb"],
      params["ln2_g"], params["ln2_b"], params["wqkv"],
      params["ln3_g"], params["ln3_b"],
      params["w1"], params["b1"], params["w2"], params["b2"])
    return out[:, :, :L]


# ----------------------------------------------------------------- params ----
def init_params(key, D, K, num_conv, num_heads=1):
    """Deterministic synthetic parameters matching the module's shapes.
    Conv1d weights are stored in torch (out_ch, in_ch) layout (= weight[:, :, 0]);
    matmul weights are stored in bf16 (MXU-native), per-channel params as (D, 1).
    The attention scale 1/sqrt(D/num_heads) is folded into the Q rows of wqkv."""
    keys = jax.random.split(key, 8)
    sc = 1.0 / math.sqrt(D)
    dh = D // num_heads
    bf16 = jnp.bfloat16
    f32 = jnp.float32
    wq = jax.random.normal(keys[3], (D, D), f32) * sc * (dh ** -0.5)  # scale folded
    wk = jax.random.normal(keys[6], (D, D), f32) * sc
    wv = jax.random.normal(keys[7], (D, D), f32) * sc
    return dict(
        # conv blocks, stacked along a leading num_conv axis
        conv_ln_g=jnp.ones((num_conv, D, 1), f32),
        conv_ln_b=jnp.zeros((num_conv, D, 1), f32),
        conv_dw=(jax.random.normal(keys[0], (num_conv, D, K), f32)
                 / math.sqrt(K)),
        conv_pw=(jax.random.normal(keys[1], (num_conv, D, D), f32)
                 * sc).astype(bf16),
        conv_pb=jax.random.normal(keys[2], (num_conv, D, 1), f32) * 0.01,
        # self-attention: rows [0:D]=query_conv (pre-scaled), [D:2D]=K, [2D:3D]=V
        ln2_g=jnp.ones((D, 1), f32),
        ln2_b=jnp.zeros((D, 1), f32),
        wqkv=jnp.concatenate([wq, wk, wv], axis=0).astype(bf16),
        # feed-forward
        ln3_g=jnp.ones((D, 1), f32),
        ln3_b=jnp.zeros((D, 1), f32),
        w1=(jax.random.normal(keys[4], (D, D), f32) * sc).astype(bf16),
        b1=jnp.zeros((D, 1), f32),
        w2=(jax.random.normal(keys[5], (D, D), f32) * sc).astype(bf16),
        b2=jnp.zeros((D, 1), f32),
    )


# ------------------------------------------------------------------- main ----
if __name__ == "__main__":
    B, D, L = 2, 32, 16          # batch, model_dim, seq_len
    K, H, NUM_CONV = 7, 4, 2     # kernel_size, num_heads, num_conv

    key = jax.random.PRNGKey(0)
    k_p, k_x = jax.random.split(key)
    params = init_params(k_p, D, K, NUM_CONV, H)

    x = jax.random.normal(k_x, (B, D, L), jnp.float32)            # torch NCL layout
    mask = jnp.ones((B, L), jnp.float32).at[0, -3:].set(0.0)      # mask last 3 keys, batch 0

    fwd = jax.jit(lambda xx, mm, pp: qanet_encoder_block(
        xx, mm, pp, l=1, blks=1, kernel_size=K, num_heads=H))
    out = jax.block_until_ready(fwd(x, mask, params))

    assert out.shape == (B, D, L), out.shape
    assert bool(jnp.all(jnp.isfinite(out)))
    print("KERNEL_OK")
</pallas_src>

<mosaic_0001>
module attributes {stable_mosaic.version = 11 : i64} {
  func.func @kernel(%arg0: i32, %arg1: memref<1x32x128xf32, #tpu.memory_space<vmem>>, %arg2: memref<1x1x128xf32, #tpu.memory_space<vmem>>, %arg3: memref<32x128xf32, #tpu.memory_space<vmem>>, %arg4: memref<2x32x1xf32, #tpu.memory_space<vmem>>, %arg5: memref<2x32x1xf32, #tpu.memory_space<vmem>>, %arg6: memref<2x32x7xf32, #tpu.memory_space<vmem>>, %arg7: memref<2x32x32xbf16, #tpu.memory_space<vmem>>, %arg8: memref<2x32x1xf32, #tpu.memory_space<vmem>>, %arg9: memref<32x1xf32, #tpu.memory_space<vmem>>, %arg10: memref<32x1xf32, #tpu.memory_space<vmem>>, %arg11: memref<96x32xbf16, #tpu.memory_space<vmem>>, %arg12: memref<32x1xf32, #tpu.memory_space<vmem>>, %arg13: memref<32x1xf32, #tpu.memory_space<vmem>>, %arg14: memref<32x32xbf16, #tpu.memory_space<vmem>>, %arg15: memref<32x1xf32, #tpu.memory_space<vmem>>, %arg16: memref<32x32xbf16, #tpu.memory_space<vmem>>, %arg17: memref<32x1xf32, #tpu.memory_space<vmem>>, %arg18: memref<1x32x128xf32, #tpu.memory_space<vmem>>, %arg19: memref<96x128xf32, #tpu.memory_space<vmem>>, %arg20: memref<32x128xf32, #tpu.memory_space<vmem>>) attributes {dimension_semantics = [#tpu.dimension_semantics<parallel>], iteration_bounds = array<i64: 2>, scalar_prefetch = 0 : i64, scratch_operands = 2 : i64, tpu.core_type = #tpu.core_type<tc>, window_params = [{transform_indices = @transform_0, window_bounds = array<i64: 1, 32, 128>}, {transform_indices = @transform_1, window_bounds = array<i64: 1, 1, 128>}, {pipeline_mode = #tpu.pipeline_mode<synchronous>, transform_indices = @transform_2, window_bounds = array<i64: 32, 128>}, {pipeline_mode = #tpu.pipeline_mode<synchronous>, transform_indices = @transform_3, window_bounds = array<i64: 2, 32, 1>}, {pipeline_mode = #tpu.pipeline_mode<synchronous>, transform_indices = @transform_4, window_bounds = array<i64: 2, 32, 1>}, {pipeline_mode = #tpu.pipeline_mode<synchronous>, transform_indices = @transform_5, window_bounds = array<i64: 2, 32, 7>}, {pipeline_mode = #tpu.pipeline_mode<synchronous>, transform_indices = @transform_6, window_bounds = array<i64: 2, 32, 32>}, {pipeline_mode = #tpu.pipeline_mode<synchronous>, transform_indices = @transform_7, window_bounds = array<i64: 2, 32, 1>}, {pipeline_mode = #tpu.pipeline_mode<synchronous>, transform_indices = @transform_8, window_bounds = array<i64: 32, 1>}, {pipeline_mode = #tpu.pipeline_mode<synchronous>, transform_indices = @transform_9, window_bounds = array<i64: 32, 1>}, {pipeline_mode = #tpu.pipeline_mode<synchronous>, transform_indices = @transform_10, window_bounds = array<i64: 96, 32>}, {pipeline_mode = #tpu.pipeline_mode<synchronous>, transform_indices = @transform_11, window_bounds = array<i64: 32, 1>}, {pipeline_mode = #tpu.pipeline_mode<synchronous>, transform_indices = @transform_12, window_bounds = array<i64: 32, 1>}, {pipeline_mode = #tpu.pipeline_mode<synchronous>, transform_indices = @transform_13, window_bounds = array<i64: 32, 32>}, {pipeline_mode = #tpu.pipeline_mode<synchronous>, transform_indices = @transform_14, window_bounds = array<i64: 32, 1>}, {pipeline_mode = #tpu.pipeline_mode<synchronous>, transform_indices = @transform_15, window_bounds = array<i64: 32, 32>}, {pipeline_mode = #tpu.pipeline_mode<synchronous>, transform_indices = @transform_16, window_bounds = array<i64: 32, 1>}, {transform_indices = @transform_17, window_bounds = array<i64: 1, 32, 128>}]} {
    %0 = tpu.iota {dimensions = array<i32: 1>} : vector<1x128xi32>
    %c16_i32 = arith.constant 16 : i32
    %1 = vector.broadcast %c16_i32 : i32 to vector<1x128xi32>
    %2 = arith.cmpi slt, %0, %1 : vector<1x128xi32>
    %3 = arith.extui %2 : vector<1x128xi1> to vector<1x128xi32>
    %4 = arith.sitofp %3 : vector<1x128xi32> to vector<1x128xf32>
    %c0 = arith.constant 0 : index
    %c0_0 = arith.constant 0 : index
    %c0_1 = arith.constant 0 : index
    %5 = vector.load %arg1[%c0, %c0_0, %c0_1] : memref<1x32x128xf32, #tpu.memory_space<vmem>>, vector<1x32x128xf32>
    %6 = vector.shape_cast %5 : vector<1x32x128xf32> to vector<32x128xf32>
    %c0_2 = arith.constant 0 : index
    %c0_3 = arith.constant 0 : index
    %7 = vector.load %arg3[%c0_2, %c0_3] : memref<32x128xf32, #tpu.memory_space<vmem>>, vector<32x128xf32>
    %8 = arith.addf %6, %7 : vector<32x128xf32>
    %c0_4 = arith.constant 0 : index
    %c0_5 = arith.constant 0 : index
    %c0_6 = arith.constant 0 : index
    %9 = vector.load %arg4[%c0_4, %c0_5, %c0_6] : memref<2x32x1xf32, #tpu.memory_space<vmem>>, vector<1x32x1xf32>
    %10 = vector.shape_cast %9 : vector<1x32x1xf32> to vector<32x1xf32>
    %c0_7 = arith.constant 0 : index
    %c0_8 = arith.constant 0 : index
    %c0_9 = arith.constant 0 : index
    %11 = vector.load %arg5[%c0_7, %c0_8, %c0_9] : memref<2x32x1xf32, #tpu.memory_space<vmem>>, vector<1x32x1xf32>
    %12 = vector.shape_cast %11 : vector<1x32x1xf32> to vector<32x1xf32>
    %cst = arith.constant dense<0.000000e+00> : vector<128xf32>
    %13 = vector.multi_reduction <add>, %8, %cst [0] : vector<32x128xf32> to vector<128xf32>
    %14 = vector.shape_cast %13 : vector<128xf32> to vector<1x128xf32>
    %cst_10 = arith.constant 3.200000e+01 : f32
    %15 = vector.broadcast %cst_10 : f32 to vector<1x128xf32>
    %16 = arith.divf %14, %15 : vector<1x128xf32>
    %17 = vector.broadcast %16 : vector<1x128xf32> to vector<32x128xf32>
    %18 = arith.subf %8, %17 : vector<32x128xf32>
    %19 = arith.mulf %18, %18 : vector<32x128xf32>
    %cst_11 = arith.constant dense<0.000000e+00> : vector<128xf32>
    %20 = vector.multi_reduction <add>, %19, %cst_11 [0] : vector<32x128xf32> to vector<128xf32>
    %21 = vector.shape_cast %20 : vector<128xf32> to vector<1x128xf32>
    %cst_12 = arith.constant 3.200000e+01 : f32
    %22 = vector.broadcast %cst_12 : f32 to vector<1x128xf32>
    %23 = arith.divf %21, %22 : vector<1x128xf32>
    %24 = vector.broadcast %16 : vector<1x128xf32> to vector<32x128xf32>
    %25 = arith.subf %8, %24 : vector<32x128xf32>
    %cst_13 = arith.constant 9.99999974E-6 : f32
    %26 = vector.broadcast %cst_13 : f32 to vector<1x128xf32>
    %27 = arith.addf %23, %26 : vector<1x128xf32>
    %28 = math.rsqrt %27 : vector<1x128xf32>
    %29 = vector.broadcast %28 : vector<1x128xf32> to vector<32x128xf32>
    %30 = arith.mulf %25, %29 : vector<32x128xf32>
    %31 = vector.broadcast %10 : vector<32x1xf32> to vector<32x128xf32>
    %32 = arith.mulf %30, %31 : vector<32x128xf32>
    %33 = vector.broadcast %12 : vector<32x1xf32> to vector<32x128xf32>
    %34 = arith.addf %32, %33 : vector<32x128xf32>
    %35 = vector.broadcast %4 : vector<1x128xf32> to vector<32x128xf32>
    %36 = arith.mulf %34, %35 : vector<32x128xf32>
    %c0_14 = arith.constant 0 : index
    %c0_15 = arith.constant 0 : index
    %c0_16 = arith.constant 0 : index
    %37 = vector.load %arg6[%c0_14, %c0_15, %c0_16] : memref<2x32x7xf32, #tpu.memory_space<vmem>>, vector<1x32x7xf32>
    %38 = vector.shape_cast %37 : vector<1x32x7xf32> to vector<32x7xf32>
    %39 = vector.extract_strided_slice %38 {offsets = [0, 3], sizes = [32, 1], strides = [1, 1]} : vector<32x7xf32> to vector<32x1xf32>
    %40 = vector.broadcast %39 : vector<32x1xf32> to vector<32x128xf32>
    %41 = arith.mulf %36, %40 : vector<32x128xf32>
    %c3_i32 = arith.constant 3 : i32
    %42 = tpu.dynamic_rotate %36 by %c3_i32 dim 1 : vector<32x128xf32>, i32 -> vector<32x128xf32>
    %43 = vector.extract_strided_slice %38 {offsets = [0, 0], sizes = [32, 1], strides = [1, 1]} : vector<32x7xf32> to vector<32x1xf32>
    %44 = vector.broadcast %43 : vector<32x1xf32> to vector<32x128xf32>
    %45 = arith.mulf %42, %44 : vector<32x128xf32>
    %46 = arith.addf %41, %45 : vector<32x128xf32>
    %c2_i32 = arith.constant 2 : i32
    %47 = tpu.dynamic_rotate %36 by %c2_i32 dim 1 : vector<32x128xf32>, i32 -> vector<32x128xf32>
    %48 = vector.extract_strided_slice %38 {offsets = [0, 1], sizes = [32, 1], strides = [1, 1]} : vector<32x7xf32> to vector<32x1xf32>
    %49 = vector.broadcast %48 : vector<32x1xf32> to vector<32x128xf32>
    %50 = arith.mulf %47, %49 : vector<32x128xf32>
    %51 = arith.addf %46, %50 : vector<32x128xf32>
    %c1_i32 = arith.constant 1 : i32
    %52 = tpu.dynamic_rotate %36 by %c1_i32 dim 1 : vector<32x128xf32>, i32 -> vector<32x128xf32>
    %53 = vector.extract_strided_slice %38 {offsets = [0, 2], sizes = [32, 1], strides = [1, 1]} : vector<32x7xf32> to vector<32x1xf32>
    %54 = vector.broadcast %53 : vector<32x1xf32> to vector<32x128xf32>
    %55 = arith.mulf %52, %54 : vector<32x128xf32>
    %56 = arith.addf %51, %55 : vector<32x128xf32>
    %c127_i32 = arith.constant 127 : i32
    %57 = tpu.dynamic_rotate %36 by %c127_i32 dim 1 : vector<32x128xf32>, i32 -> vector<32x128xf32>
    %58 = vector.extract_strided_slice %38 {offsets = [0, 4], sizes = [32, 1], strides = [1, 1]} : vector<32x7xf32> to vector<32x1xf32>
    %59 = vector.broadcast %58 : vector<32x1xf32> to vector<32x128xf32>
    %60 = arith.mulf %57, %59 : vector<32x128xf32>
    %61 = arith.addf %56, %60 : vector<32x128xf32>
    %c126_i32 = arith.constant 126 : i32
    %62 = tpu.dynamic_rotate %36 by %c126_i32 dim 1 : vector<32x128xf32>, i32 -> vector<32x128xf32>
    %63 = vector.extract_strided_slice %38 {offsets = [0, 5], sizes = [32, 1], strides = [1, 1]} : vector<32x7xf32> to vector<32x1xf32>
    %64 = vector.broadcast %63 : vector<32x1xf32> to vector<32x128xf32>
    %65 = arith.mulf %62, %64 : vector<32x128xf32>
    %66 = arith.addf %61, %65 : vector<32x128xf32>
    %c125_i32 = arith.constant 125 : i32
    %67 = tpu.dynamic_rotate %36 by %c125_i32 dim 1 : vector<32x128xf32>, i32 -> vector<32x128xf32>
    %68 = vector.extract_strided_slice %38 {offsets = [0, 6], sizes = [32, 1], strides = [1, 1]} : vector<32x7xf32> to vector<32x1xf32>
    %69 = vector.broadcast %68 : vector<32x1xf32> to vector<32x128xf32>
    %70 = arith.mulf %67, %69 : vector<32x128xf32>
    %71 = arith.addf %66, %70 : vector<32x128xf32>
    %c0_17 = arith.constant 0 : index
    %c0_18 = arith.constant 0 : index
    %c0_19 = arith.constant 0 : index
    %72 = vector.load %arg7[%c0_17, %c0_18, %c0_19] : memref<2x32x32xbf16, #tpu.memory_space<vmem>>, vector<1x32x32xbf16>
    %73 = vector.shape_cast %72 : vector<1x32x32xbf16> to vector<32x32xbf16>
    %74 = arith.truncf %71 : vector<32x128xf32> to vector<32x128xbf16>
    %cst_20 = arith.constant dense<0.000000e+00> : vector<32x128xf32>
    %75 = tpu.matmul %73, %74, %cst_20 {dimension_numbers = #tpu.dot_dimension_numbers<[1], [0], [0], [1], [0, 0, 1, 1], [], []>} : vector<32x32xbf16>, vector<32x128xbf16>, vector<32x128xf32> -> vector<32x128xf32>
    %c0_21 = arith.constant 0 : index
    %c0_22 = arith.constant 0 : index
    %c0_23 = arith.constant 0 : index
    %76 = vector.load %arg8[%c0_21, %c0_22, %c0_23] : memref<2x32x1xf32, #tpu.memory_space<vmem>>, vector<1x32x1xf32>
    %77 = vector.shape_cast %76 : vector<1x32x1xf32> to vector<32x1xf32>
    %78 = vector.broadcast %77 : vector<32x1xf32> to vector<32x128xf32>
    %79 = arith.addf %75, %78 : vector<32x128xf32>
    %cst_24 = arith.constant 0.000000e+00 : f32
    %80 = vector.broadcast %cst_24 : f32 to vector<32x128xf32>
    %81 = arith.maximumf %79, %80 : vector<32x128xf32>
    %82 = arith.addf %8, %81 : vector<32x128xf32>
    %c1 = arith.constant 1 : index
    %c0_25 = arith.constant 0 : index
    %c0_26 = arith.constant 0 : index
    %83 = vector.load %arg4[%c1, %c0_25, %c0_26] : memref<2x32x1xf32, #tpu.memory_space<vmem>>, vector<1x32x1xf32>
    %84 = vector.shape_cast %83 : vector<1x32x1xf32> to vector<32x1xf32>
    %c1_27 = arith.constant 1 : index
    %c0_28 = arith.constant 0 : index
    %c0_29 = arith.constant 0 : index
    %85 = vector.load %arg5[%c1_27, %c0_28, %c0_29] : memref<2x32x1xf32, #tpu.memory_space<vmem>>, vector<1x32x1xf32>
    %86 = vector.shape_cast %85 : vector<1x32x1xf32> to vector<32x1xf32>
    %cst_30 = arith.constant dense<0.000000e+00> : vector<128xf32>
    %87 = vector.multi_reduction <add>, %82, %cst_30 [0] : vector<32x128xf32> to vector<128xf32>
    %88 = vector.shape_cast %87 : vector<128xf32> to vector<1x128xf32>
    %cst_31 = arith.constant 3.200000e+01 : f32
    %89 = vector.broadcast %cst_31 : f32 to vector<1x128xf32>
    %90 = arith.divf %88, %89 : vector<1x128xf32>
    %91 = vector.broadcast %90 : vector<1x128xf32> to vector<32x128xf32>
    %92 = arith.subf %82, %91 : vector<32x128xf32>
    %93 = arith.mulf %92, %92 : vector<32x128xf32>
    %cst_32 = arith.constant dense<0.000000e+00> : vector<128xf32>
    %94 = vector.multi_reduction <add>, %93, %cst_32 [0] : vector<32x128xf32> to vector<128xf32>
    %95 = vector.shape_cast %94 : vector<128xf32> to vector<1x128xf32>
    %cst_33 = arith.constant 3.200000e+01 : f32
    %96 = vector.broadcast %cst_33 : f32 to vector<1x128xf32>
    %97 = arith.divf %95, %96 : vector<1x128xf32>
    %98 = vector.broadcast %90 : vector<1x128xf32> to vector<32x128xf32>
    %99 = arith.subf %82, %98 : vector<32x128xf32>
    %cst_34 = arith.constant 9.99999974E-6 : f32
    %100 = vector.broadcast %cst_34 : f32 to vector<1x128xf32>
    %101 = arith.addf %97, %100 : vector<1x128xf32>
    %102 = math.rsqrt %101 : vector<1x128xf32>
    %103 = vector.broadcast %102 : vector<1x128xf32> to vector<32x128xf32>
    %104 = arith.mulf %99, %103 : vector<32x128xf32>
    %105 = vector.broadcast %84 : vector<32x1xf32> to vector<32x128xf32>
    %106 = arith.mulf %104, %105 : vector<32x128xf32>
    %107 = vector.broadcast %86 : vector<32x1xf32> to vector<32x128xf32>
    %108 = arith.addf %106, %107 : vector<32x128xf32>
    %109 = vector.broadcast %4 : vector<1x128xf32> to vector<32x128xf32>
    %110 = arith.mulf %108, %109 : vector<32x128xf32>
    %c1_35 = arith.constant 1 : index
    %c0_36 = arith.constant 0 : index
    %c0_37 = arith.constant 0 : index
    %111 = vector.load %arg6[%c1_35, %c0_36, %c0_37] : memref<2x32x7xf32, #tpu.memory_space<vmem>>, vector<1x32x7xf32>
    %112 = vector.shape_cast %111 : vector<1x32x7xf32> to vector<32x7xf32>
    %113 = vector.extract_strided_slice %112 {offsets = [0, 3], sizes = [32, 1], strides = [1, 1]} : vector<32x7xf32> to vector<32x1xf32>
    %114 = vector.broadcast %113 : vector<32x1xf32> to vector<32x128xf32>
    %115 = arith.mulf %110, %114 : vector<32x128xf32>
    %c3_i32_38 = arith.constant 3 : i32
    %116 = tpu.dynamic_rotate %110 by %c3_i32_38 dim 1 : vector<32x128xf32>, i32 -> vector<32x128xf32>
    %117 = vector.extract_strided_slice %112 {offsets = [0, 0], sizes = [32, 1], strides = [1, 1]} : vector<32x7xf32> to vector<32x1xf32>
    %118 = vector.broadcast %117 : vector<32x1xf32> to vector<32x128xf32>
    %119 = arith.mulf %116, %118 : vector<32x128xf32>
    %120 = arith.addf %115, %119 : vector<32x128xf32>
    %c2_i32_39 = arith.constant 2 : i32
    %121 = tpu.dynamic_rotate %110 by %c2_i32_39 dim 1 : vector<32x128xf32>, i32 -> vector<32x128xf32>
    %122 = vector.extract_strided_slice %112 {offsets = [0, 1], sizes = [32, 1], strides = [1, 1]} : vector<32x7xf32> to vector<32x1xf32>
    %123 = vector.broadcast %122 : vector<32x1xf32> to vector<32x128xf32>
    %124 = arith.mulf %121, %123 : vector<32x128xf32>
    %125 = arith.addf %120, %124 : vector<32x128xf32>
    %c1_i32_40 = arith.constant 1 : i32
    %126 = tpu.dynamic_rotate %110 by %c1_i32_40 dim 1 : vector<32x128xf32>, i32 -> vector<32x128xf32>
    %127 = vector.extract_strided_slice %112 {offsets = [0, 2], sizes = [32, 1], strides = [1, 1]} : vector<32x7xf32> to vector<32x1xf32>
    %128 = vector.broadcast %127 : vector<32x1xf32> to vector<32x128xf32>
    %129 = arith.mulf %126, %128 : vector<32x128xf32>
    %130 = arith.addf %125, %129 : vector<32x128xf32>
    %c127_i32_41 = arith.constant 127 : i32
    %131 = tpu.dynamic_rotate %110 by %c127_i32_41 dim 1 : vector<32x128xf32>, i32 -> vector<32x128xf32>
    %132 = vector.extract_strided_slice %112 {offsets = [0, 4], sizes = [32, 1], strides = [1, 1]} : vector<32x7xf32> to vector<32x1xf32>
    %133 = vector.broadcast %132 : vector<32x1xf32> to vector<32x128xf32>
    %134 = arith.mulf %131, %133 : vector<32x128xf32>
    %135 = arith.addf %130, %134 : vector<32x128xf32>
    %c126_i32_42 = arith.constant 126 : i32
    %136 = tpu.dynamic_rotate %110 by %c126_i32_42 dim 1 : vector<32x128xf32>, i32 -> vector<32x128xf32>
    %137 = vector.extract_strided_slice %112 {offsets = [0, 5], sizes = [32, 1], strides = [1, 1]} : vector<32x7xf32> to vector<32x1xf32>
    %138 = vector.broadcast %137 : vector<32x1xf32> to vector<32x128xf32>
    %139 = arith.mulf %136, %138 : vector<32x128xf32>
    %140 = arith.addf %135, %139 : vector<32x128xf32>
    %c125_i32_43 = arith.constant 125 : i32
    %141 = tpu.dynamic_rotate %110 by %c125_i32_43 dim 1 : vector<32x128xf32>, i32 -> vector<32x128xf32>
    %142 = vector.extract_strided_slice %112 {offsets = [0, 6], sizes = [32, 1], strides = [1, 1]} : vector<32x7xf32> to vector<32x1xf32>
    %143 = vector.broadcast %142 : vector<32x1xf32> to vector<32x128xf32>
    %144 = arith.mulf %141, %143 : vector<32x128xf32>
    %145 = arith.addf %140, %144 : vector<32x128xf32>
    %c1_44 = arith.constant 1 : index
    %c0_45 = arith.constant 0 : index
    %c0_46 = arith.constant 0 : index
    %146 = vector.load %arg7[%c1_44, %c0_45, %c0_46] : memref<2x32x32xbf16, #tpu.memory_space<vmem>>, vector<1x32x32xbf16>
    %147 = vector.shape_cast %146 : vector<1x32x32xbf16> to vector<32x32xbf16>
    %148 = arith.truncf %145 : vector<32x128xf32> to vector<32x128xbf16>
    %cst_47 = arith.constant dense<0.000000e+00> : vector<32x128xf32>
    %149 = tpu.matmul %147, %148, %cst_47 {dimension_numbers = #tpu.dot_dimension_numbers<[1], [0], [0], [1], [0, 0, 1, 1], [], []>} : vector<32x32xbf16>, vector<32x128xbf16>, vector<32x128xf32> -> vector<32x128xf32>
    %c1_48 = arith.constant 1 : index
    %c0_49 = arith.constant 0 : index
    %c0_50 = arith.constant 0 : index
    %150 = vector.load %arg8[%c1_48, %c0_49, %c0_50] : memref<2x32x1xf32, #tpu.memory_space<vmem>>, vector<1x32x1xf32>
    %151 = vector.shape_cast %150 : vector<1x32x1xf32> to vector<32x1xf32>
    %152 = vector.broadcast %151 : vector<32x1xf32> to vector<32x128xf32>
    %153 = arith.addf %149, %152 : vector<32x128xf32>
    %cst_51 = arith.constant 0.000000e+00 : f32
    %154 = vector.broadcast %cst_51 : f32 to vector<32x128xf32>
    %155 = arith.maximumf %153, %154 : vector<32x128xf32>
    %156 = arith.addf %82, %155 : vector<32x128xf32>
    %c0_52 = arith.constant 0 : index
    %c0_53 = arith.constant 0 : index
    %157 = vector.load %arg20[%c0_52, %c0_53] : memref<32x128xf32, #tpu.memory_space<vmem>>, vector<32x128xf32>
    tpu.vector_store %arg20[%c0_52, %c0_53], %156 {strides = array<i32>} : memref<32x128xf32, #tpu.memory_space<vmem>>, vector<32x128xf32>,
    %c0_54 = arith.constant 0 : index
    %c0_55 = arith.constant 0 : index
    %158 = vector.load %arg9[%c0_54, %c0_55] : memref<32x1xf32, #tpu.memory_space<vmem>>, vector<32x1xf32>
    %c0_56 = arith.constant 0 : index
    %c0_57 = arith.constant 0 : index
    %159 = vector.load %arg10[%c0_56, %c0_57] : memref<32x1xf32, #tpu.memory_space<vmem>>, vector<32x1xf32>
    %cst_58 = arith.constant dense<0.000000e+00> : vector<128xf32>
    %160 = vector.multi_reduction <add>, %156, %cst_58 [0] : vector<32x128xf32> to vector<128xf32>
    %161 = vector.shape_cast %160 : vector<128xf32> to vector<1x128xf32>
    %cst_59 = arith.constant 3.200000e+01 : f32
    %162 = vector.broadcast %cst_59 : f32 to vector<1x128xf32>
    %163 = arith.divf %161, %162 : vector<1x128xf32>
    %164 = vector.broadcast %163 : vector<1x128xf32> to vector<32x128xf32>
    %165 = arith.subf %156, %164 : vector<32x128xf32>
    %166 = arith.mulf %165, %165 : vector<32x128xf32>
    %cst_60 = arith.constant dense<0.000000e+00> : vector<128xf32>
    %167 = vector.multi_reduction <add>, %166, %cst_60 [0] : vector<32x128xf32> to vector<128xf32>
    %168 = vector.shape_cast %167 : vector<128xf32> to vector<1x128xf32>
    %cst_61 = arith.constant 3.200000e+01 : f32
    %169 = vector.broadcast %cst_61 : f32 to vector<1x128xf32>
    %170 = arith.divf %168, %169 : vector<1x128xf32>
    %171 = vector.broadcast %163 : vector<1x128xf32> to vector<32x128xf32>
    %172 = arith.subf %156, %171 : vector<32x128xf32>
    %cst_62 = arith.constant 9.99999974E-6 : f32
    %173 = vector.broadcast %cst_62 : f32 to vector<1x128xf32>
    %174 = arith.addf %170, %173 : vector<1x128xf32>
    %175 = math.rsqrt %174 : vector<1x128xf32>
    %176 = vector.broadcast %175 : vector<1x128xf32> to vector<32x128xf32>
    %177 = arith.mulf %172, %176 : vector<32x128xf32>
    %178 = vector.broadcast %158 : vector<32x1xf32> to vector<32x128xf32>
    %179 = arith.mulf %177, %178 : vector<32x128xf32>
    %180 = vector.broadcast %159 : vector<32x1xf32> to vector<32x128xf32>
    %181 = arith.addf %179, %180 : vector<32x128xf32>
    %c0_63 = arith.constant 0 : index
    %c0_64 = arith.constant 0 : index
    %182 = vector.load %arg11[%c0_63, %c0_64] : memref<96x32xbf16, #tpu.memory_space<vmem>>, vector<96x32xbf16>
    %183 = arith.truncf %181 : vector<32x128xf32> to vector<32x128xbf16>
    %cst_65 = arith.constant dense<0.000000e+00> : vector<96x128xf32>
    %184 = tpu.matmul %182, %183, %cst_65 {dimension_numbers = #tpu.dot_dimension_numbers<[1], [0], [0], [1], [0, 0, 1, 1], [], []>} : vector<96x32xbf16>, vector<32x128xbf16>, vector<96x128xf32> -> vector<96x128xf32>
    %c0_66 = arith.constant 0 : index
    %c0_67 = arith.constant 0 : index
    %185 = vector.load %arg19[%c0_66, %c0_67] : memref<96x128xf32, #tpu.memory_space<vmem>>, vector<96x128xf32>
    tpu.vector_store %arg19[%c0_66, %c0_67], %184 {strides = array<i32>} : memref<96x128xf32, #tpu.memory_space<vmem>>, vector<96x128xf32>,
    %c0_68 = arith.constant 0 : index
    %c0_69 = arith.constant 0 : index
    %c0_70 = arith.constant 0 : index
    %186 = vector.load %arg2[%c0_68, %c0_69, %c0_70] : memref<1x1x128xf32, #tpu.memory_space<vmem>>, vector<1x1x128xf32>
    %187 = vector.shape_cast %186 : vector<1x1x128xf32> to vector<1x128xf32>
    %cst_71 = arith.constant 1.000000e+00 : f32
    %188 = vector.broadcast %cst_71 : f32 to vector<1x128xf32>
    %189 = arith.subf %188, %187 : vector<1x128xf32>
    %cst_72 = arith.constant -1.000000e+30 : f32
    %190 = vector.broadcast %cst_72 : f32 to vector<1x128xf32>
    %191 = arith.mulf %189, %190 : vector<1x128xf32>
    %c0_i32 = arith.constant 0 : i32
    %c4_i32 = arith.constant 4 : i32
    %192 = arith.addi %c0_i32, %c4_i32 : i32
    %c1_i32_73 = arith.constant 1 : i32
    scf.for %arg21 = %c0_i32 to %192 step %c1_i32_73  : i32 {
      %c8_i32 = arith.constant 8 : i32
      %236 = arith.muli %arg21, %c8_i32 : i32
      %237 = tpu.assume_multiple %236, 8 : i32
      %238 = arith.index_cast %237 : i32 to index
      %c0_100 = arith.constant 0 : index
      %239 = vector.load %arg19[%238, %c0_100] : memref<96x128xf32, #tpu.memory_space<vmem>>, vector<8x128xf32>
      %c32_i32 = arith.constant 32 : i32
      %240 = arith.addi %c32_i32, %237 : i32
      %241 = arith.index_cast %240 : i32 to index
      %c0_101 = arith.constant 0 : index
      %242 = vector.load %arg19[%241, %c0_101] : memref<96x128xf32, #tpu.memory_space<vmem>>, vector<8x128xf32>
      %c64_i32 = arith.constant 64 : i32
      %243 = arith.addi %c64_i32, %237 : i32
      %244 = arith.index_cast %243 : i32 to index
      %c0_102 = arith.constant 0 : index
      %245 = vector.load %arg19[%244, %c0_102] : memref<96x128xf32, #tpu.memory_space<vmem>>, vector<8x128xf32>
      %246 = arith.truncf %239 : vector<8x128xf32> to vector<8x128xbf16>
      %247 = arith.truncf %242 : vector<8x128xf32> to vector<8x128xbf16>
      %cst_103 = arith.constant dense<0.000000e+00> : vector<128x128xf32>
      %248 = tpu.matmul %246, %247, %cst_103 {dimension_numbers = #tpu.dot_dimension_numbers<[0], [0], [1], [1], [0, 1, 1, 1], [], []>} : vector<8x128xbf16>, vector<8x128xbf16>, vector<128x128xf32> -> vector<128x128xf32>
      %249 = vector.broadcast %187 : vector<1x128xf32> to vector<128x128xf32>
      %250 = arith.mulf %248, %249 : vector<128x128xf32>
      %251 = vector.broadcast %191 : vector<1x128xf32> to vector<128x128xf32>
      %252 = arith.addf %250, %251 : vector<128x128xf32>
      %cst_104 = arith.constant dense<0xFF800000> : vector<128xf32>
      %253 = vector.multi_reduction <maximumf>, %252, %cst_104 [1] : vector<128x128xf32> to vector<128xf32>
      %254 = vector.shape_cast %253 : vector<128xf32> to vector<128x1xf32>
      %255 = vector.broadcast %254 : vector<128x1xf32> to vector<128x128xf32>
      %256 = arith.subf %252, %255 : vector<128x128xf32>
      %257 = math.exp %256 : vector<128x128xf32>
      %cst_105 = arith.constant dense<0.000000e+00> : vector<128xf32>
      %258 = vector.multi_reduction <add>, %257, %cst_105 [1] : vector<128x128xf32> to vector<128xf32>
      %259 = vector.shape_cast %258 : vector<128xf32> to vector<128x1xf32>
      %260 = tpu.reciprocal %259 {approx = true} : vector<128x1xf32> -> vector<128x1xf32>
      %261 = vector.broadcast %260 : vector<128x1xf32> to vector<128x128xf32>
      %262 = arith.mulf %257, %261 : vector<128x128xf32>
      %263 = arith.truncf %245 : vector<8x128xf32> to vector<8x128xbf16>
      %264 = arith.truncf %262 : vector<128x128xf32> to vector<128x128xbf16>
      %cst_106 = arith.constant dense<0.000000e+00> : vector<8x128xf32>
      %265 = tpu.matmul %263, %264, %cst_106 {dimension_numbers = #tpu.dot_dimension_numbers<[1], [1], [0], [0], [0, 0, 1, 0], [], []>} : vector<8x128xbf16>, vector<128x128xbf16>, vector<8x128xf32> -> vector<8x128xf32>
      %266 = arith.index_cast %237 : i32 to index
      %c0_107 = arith.constant 0 : index
      %267 = vector.load %arg20[%266, %c0_107] : memref<32x128xf32, #tpu.memory_space<vmem>>, vector<8x128xf32>
      %268 = arith.addf %267, %265 : vector<8x128xf32>
      %269 = arith.index_cast %237 : i32 to index
      %c0_108 = arith.constant 0 : index
      %270 = vector.load %arg20[%269, %c0_108] : memref<32x128xf32, #tpu.memory_space<vmem>>, vector<8x128xf32>
      tpu.vector_store %arg20[%269, %c0_108], %268 {strides = array<i32>} : memref<32x128xf32, #tpu.memory_space<vmem>>, vector<8x128xf32>,
    }
    %c4_i32_74 = arith.constant 4 : i32
    %c0_75 = arith.constant 0 : index
    %c0_76 = arith.constant 0 : index
    %193 = vector.load %arg20[%c0_75, %c0_76] : memref<32x128xf32, #tpu.memory_space<vmem>>, vector<32x128xf32>
    %c0_77 = arith.constant 0 : index
    %c0_78 = arith.constant 0 : index
    %194 = vector.load %arg12[%c0_77, %c0_78] : memref<32x1xf32, #tpu.memory_space<vmem>>, vector<32x1xf32>
    %c0_79 = arith.constant 0 : index
    %c0_80 = arith.constant 0 : index
    %195 = vector.load %arg13[%c0_79, %c0_80] : memref<32x1xf32, #tpu.memory_space<vmem>>, vector<32x1xf32>
    %cst_81 = arith.constant dense<0.000000e+00> : vector<128xf32>
    %196 = vector.multi_reduction <add>, %193, %cst_81 [0] : vector<32x128xf32> to vector<128xf32>
    %197 = vector.shape_cast %196 : vector<128xf32> to vector<1x128xf32>
    %cst_82 = arith.constant 3.200000e+01 : f32
    %198 = vector.broadcast %cst_82 : f32 to vector<1x128xf32>
    %199 = arith.divf %197, %198 : vector<1x128xf32>
    %200 = vector.broadcast %199 : vector<1x128xf32> to vector<32x128xf32>
    %201 = arith.subf %193, %200 : vector<32x128xf32>
    %202 = arith.mulf %201, %201 : vector<32x128xf32>
    %cst_83 = arith.constant dense<0.000000e+00> : vector<128xf32>
    %203 = vector.multi_reduction <add>, %202, %cst_83 [0] : vector<32x128xf32> to vector<128xf32>
    %204 = vector.shape_cast %203 : vector<128xf32> to vector<1x128xf32>
    %cst_84 = arith.constant 3.200000e+01 : f32
    %205 = vector.broadcast %cst_84 : f32 to vector<1x128xf32>
    %206 = arith.divf %204, %205 : vector<1x128xf32>
    %207 = vector.broadcast %199 : vector<1x128xf32> to vector<32x128xf32>
    %208 = arith.subf %193, %207 : vector<32x128xf32>
    %cst_85 = arith.constant 9.99999974E-6 : f32
    %209 = vector.broadcast %cst_85 : f32 to vector<1x128xf32>
    %210 = arith.addf %206, %209 : vector<1x128xf32>
    %211 = math.rsqrt %210 : vector<1x128xf32>
    %212 = vector.broadcast %211 : vector<1x128xf32> to vector<32x128xf32>
    %213 = arith.mulf %208, %212 : vector<32x128xf32>
    %214 = vector.broadcast %194 : vector<32x1xf32> to vector<32x128xf32>
    %215 = arith.mulf %213, %214 : vector<32x128xf32>
    %216 = vector.broadcast %195 : vector<32x1xf32> to vector<32x128xf32>
    %217 = arith.addf %215, %216 : vector<32x128xf32>
    %c0_86 = arith.constant 0 : index
    %c0_87 = arith.constant 0 : index
    %218 = vector.load %arg14[%c0_86, %c0_87] : memref<32x32xbf16, #tpu.memory_space<vmem>>, vector<32x32xbf16>
    %219 = arith.truncf %217 : vector<32x128xf32> to vector<32x128xbf16>
    %cst_88 = arith.constant dense<0.000000e+00> : vector<32x128xf32>
    %220 = tpu.matmul %218, %219, %cst_88 {dimension_numbers = #tpu.dot_dimension_numbers<[1], [0], [0], [1], [0, 0, 1, 1], [], []>} : vector<32x32xbf16>, vector<32x128xbf16>, vector<32x128xf32> -> vector<32x128xf32>
    %c0_89 = arith.constant 0 : index
    %c0_90 = arith.constant 0 : index
    %221 = vector.load %arg15[%c0_89, %c0_90] : memref<32x1xf32, #tpu.memory_space<vmem>>, vector<32x1xf32>
    %222 = vector.broadcast %221 : vector<32x1xf32> to vector<32x128xf32>
    %223 = arith.addf %220, %222 : vector<32x128xf32>
    %cst_91 = arith.constant 0.000000e+00 : f32
    %224 = vector.broadcast %cst_91 : f32 to vector<32x128xf32>
    %225 = arith.maximumf %223, %224 : vector<32x128xf32>
    %c0_92 = arith.constant 0 : index
    %c0_93 = arith.constant 0 : index
    %226 = vector.load %arg16[%c0_92, %c0_93] : memref<32x32xbf16, #tpu.memory_space<vmem>>, vector<32x32xbf16>
    %227 = arith.truncf %225 : vector<32x128xf32> to vector<32x128xbf16>
    %cst_94 = arith.constant dense<0.000000e+00> : vector<32x128xf32>
    %228 = tpu.matmul %226, %227, %cst_94 {dimension_numbers = #tpu.dot_dimension_numbers<[1], [0], [0], [1], [0, 0, 1, 1], [], []>} : vector<32x32xbf16>, vector<32x128xbf16>, vector<32x128xf32> -> vector<32x128xf32>
    %c0_95 = arith.constant 0 : index
    %c0_96 = arith.constant 0 : index
    %229 = vector.load %arg17[%c0_95, %c0_96] : memref<32x1xf32, #tpu.memory_space<vmem>>, vector<32x1xf32>
    %230 = vector.broadcast %229 : vector<32x1xf32> to vector<32x128xf32>
    %231 = arith.addf %228, %230 : vector<32x128xf32>
    %232 = arith.addf %193, %231 : vector<32x128xf32>
    %c0_97 = arith.constant 0 : index
    %c0_98 = arith.constant 0 : index
    %c0_99 = arith.constant 0 : index
    %233 = vector.load %arg18[%c0_97, %c0_98, %c0_99] : memref<1x32x128xf32, #tpu.memory_space<vmem>>, vector<1x32x128xf32>
    %234 = vector.shape_cast %233 : vector<1x32x128xf32> to vector<32x128xf32>
    %235 = vector.shape_cast %232 : vector<32x128xf32> to vector<1x32x128xf32>
    tpu.vector_store %arg18[%c0_97, %c0_98, %c0_99], %235 {strides = array<i32>} : memref<1x32x128xf32, #tpu.memory_space<vmem>>, vector<1x32x128xf32>,
    return
  }
  func.func @transform_0(%arg0: i32) -> (i32, i32, i32) {
    %c0_i32 = arith.constant 0 : i32
    %c0_i32_0 = arith.constant 0 : i32
    %c0_i32_1 = arith.constant 0 : i32
    return %arg0, %c0_i32, %c0_i32_0 : i32, i32, i32
  }
  func.func @transform_1(%arg0: i32) -> (i32, i32, i32) {
    %c0_i32 = arith.constant 0 : i32
    %c0_i32_0 = arith.constant 0 : i32
    %c0_i32_1 = arith.constant 0 : i32
    return %arg0, %c0_i32, %c0_i32_0 : i32, i32, i32
  }
  func.func @transform_2(%arg0: i32) -> (i32, i32) {
    %c0_i32 = arith.constant 0 : i32
    %c0_i32_0 = arith.constant 0 : i32
    %c0_i32_1 = arith.constant 0 : i32
    return %c0_i32, %c0_i32_0 : i32, i32
  }
  func.func @transform_3(%arg0: i32) -> (i32, i32, i32) {
    %c0_i32 = arith.constant 0 : i32
    %c0_i32_0 = arith.constant 0 : i32
    %c0_i32_1 = arith.constant 0 : i32
    %c0_i32_2 = arith.constant 0 : i32
    return %c0_i32, %c0_i32_0, %c0_i32_1 : i32, i32, i32
  }
  func.func @transform_4(%arg0: i32) -> (i32, i32, i32) {
    %c0_i32 = arith.constant 0 : i32
    %c0_i32_0 = arith.constant 0 : i32
    %c0_i32_1 = arith.constant 0 : i32
    %c0_i32_2 = arith.constant 0 : i32
    return %c0_i32, %c0_i32_0, %c0_i32_1 : i32, i32, i32
  }
  func.func @transform_5(%arg0: i32) -> (i32, i32, i32) {
    %c0_i32 = arith.constant 0 : i32
    %c0_i32_0 = arith.constant 0 : i32
    %c0_i32_1 = arith.constant 0 : i32
    %c0_i32_2 = arith.constant 0 : i32
    return %c0_i32, %c0_i32_0, %c0_i32_1 : i32, i32, i32
  }
  func.func @transform_6(%arg0: i32) -> (i32, i32, i32) {
    %c0_i32 = arith.constant 0 : i32
    %c0_i32_0 = arith.constant 0 : i32
    %c0_i32_1 = arith.constant 0 : i32
    %c0_i32_2 = arith.constant 0 : i32
    return %c0_i32, %c0_i32_0, %c0_i32_1 : i32, i32, i32
  }
  func.func @transform_7(%arg0: i32) -> (i32, i32, i32) {
    %c0_i32 = arith.constant 0 : i32
    %c0_i32_0 = arith.constant 0 : i32
    %c0_i32_1 = arith.constant 0 : i32
    %c0_i32_2 = arith.constant 0 : i32
    return %c0_i32, %c0_i32_0, %c0_i32_1 : i32, i32, i32
  }
  func.func @transform_8(%arg0: i32) -> (i32, i32) {
    %c0_i32 = arith.constant 0 : i32
    %c0_i32_0 = arith.constant 0 : i32
    %c0_i32_1 = arith.constant 0 : i32
    return %c0_i32, %c0_i32_0 : i32, i32
  }
  func.func @transform_9(%arg0: i32) -> (i32, i32) {
    %c0_i32 = arith.constant 0 : i32
    %c0_i32_0 = arith.constant 0 : i32
    %c0_i32_1 = arith.constant 0 : i32
    return %c0_i32, %c0_i32_0 : i32, i32
  }
  func.func @transform_10(%arg0: i32) -> (i32, i32) {
    %c0_i32 = arith.constant 0 : i32
    %c0_i32_0 = arith.constant 0 : i32
    %c0_i32_1 = arith.constant 0 : i32
    return %c0_i32, %c0_i32_0 : i32, i32
  }
  func.func @transform_11(%arg0: i32) -> (i32, i32) {
    %c0_i32 = arith.constant 0 : i32
    %c0_i32_0 = arith.constant 0 : i32
    %c0_i32_1 = arith.constant 0 : i32
    return %c0_i32, %c0_i32_0 : i32, i32
  }
  func.func @transform_12(%arg0: i32) -> (i32, i32) {
    %c0_i32 = arith.constant 0 : i32
    %c0_i32_0 = arith.constant 0 : i32
    %c0_i32_1 = arith.constant 0 : i32
    return %c0_i32, %c0_i32_0 : i32, i32
  }
  func.func @transform_13(%arg0: i32) -> (i32, i32) {
    %c0_i32 = arith.constant 0 : i32
    %c0_i32_0 = arith.constant 0 : i32
    %c0_i32_1 = arith.constant 0 : i32
    return %c0_i32, %c0_i32_0 : i32, i32
  }
  func.func @transform_14(%arg0: i32) -> (i32, i32) {
    %c0_i32 = arith.constant 0 : i32
    %c0_i32_0 = arith.constant 0 : i32
    %c0_i32_1 = arith.constant 0 : i32
    return %c0_i32, %c0_i32_0 : i32, i32
  }
  func.func @transform_15(%arg0: i32) -> (i32, i32) {
    %c0_i32 = arith.constant 0 : i32
    %c0_i32_0 = arith.constant 0 : i32
    %c0_i32_1 = arith.constant 0 : i32
    return %c0_i32, %c0_i32_0 : i32, i32
  }
  func.func @transform_16(%arg0: i32) -> (i32, i32) {
    %c0_i32 = arith.constant 0 : i32
    %c0_i32_0 = arith.constant 0 : i32
    %c0_i32_1 = arith.constant 0 : i32
    return %c0_i32, %c0_i32_0 : i32, i32
  }
  func.func @transform_17(%arg0: i32) -> (i32, i32, i32) {
    %c0_i32 = arith.constant 0 : i32
    %c0_i32_0 = arith.constant 0 : i32
    %c0_i32_1 = arith.constant 0 : i32
    return %arg0, %c0_i32, %c0_i32_0 : i32, i32, i32
  }
}

</mosaic_0001>

<bundles_post_ra>
// kernel: _lambda_.1
= control target key start
LH: loop header
LB: loop body
LE: loop exit
PB: predicated region body
PF: predicated region fallthrough
CT: control target
= control target key end

     0   :  { %s2942_s24 = smov 0   ;;  %s3781_s0 = inlined_call_operand.vmem [shape: f32[2,32,128], index: 0, kind: input, shape index: {}]   ;;  %s3782_s1 = inlined_call_operand.vmem [shape: f32[2,1,128], index: 1, kind: input, shape index: {}]   ;;  %s3783_s2 = inlined_call_operand.vmem [shape: f32[32,128], index: 2, kind: input, shape index: {}]   ;;  %s3784_s3 = inlined_call_operand.vmem [shape: f32[2,32,1], index: 3, kind: input, shape index: {}]   ;;  %s3785_s4 = inlined_call_operand.vmem [shape: f32[2,32,1], index: 4, kind: input, shape index: {}]   ;;  %s3786_s5 = inlined_call_operand.vmem [shape: f32[2,32,7], index: 5, kind: input, shape index: {}]   ;;  %s3787_s6 = inlined_call_operand.vmem [shape: bf16[2,32,32], index: 6, kind: input, shape index: {}]   ;;  %s3788_s7 = inlined_call_operand.vmem [shape: f32[2,32,1], index: 7, kind: input, shape index: {}]   ;;  %s3789_s8 = inlined_call_operand.vmem [shape: f32[32,1], index: 8, kind: input, shape index: {}]   ;;  %s3790_s9 = inlined_call_operand.vmem [shape: f32[32,1], index: 9, kind: input, shape index: {}]   ;;  %s3791_s10 = inlined_call_operand.vmem [shape: bf16[96,32], index: 10, kind: input, shape index: {}]   ;;  %s3792_s11 = inlined_call_operand.vmem [shape: f32[32,1], index: 11, kind: input, shape index: {}]   ;;  %s3793_s12 = inlined_call_operand.vmem [shape: f32[32,1], index: 12, kind: input, shape index: {}]   ;;  %s3794_s13 = inlined_call_operand.vmem [shape: bf16[32,32], index: 13, kind: input, shape index: {}]   ;;  %s3795_s14 = inlined_call_operand.vmem [shape: f32[32,1], index: 14, kind: input, shape index: {}]   ;;  %s3796_s15 = inlined_call_operand.vmem [shape: bf16[32,32], index: 15, kind: input, shape index: {}]   ;;  %s3797_s16 = inlined_call_operand.vmem [shape: f32[32,1], index: 16, kind: input, shape index: {}]   ;;  %s3798_s17 = inlined_call_operand.vmem [shape: f32[2,32,128], index: 17, kind: output, shape index: {}]  }
   0x1   :  { %3808 = sst [smem:[#allocation6_spill]] %s3781_s0 }
   0x2   :  { %3809 = sst [smem:[#allocation7_spill]] %s3782_s1 }
   0x3 LB: > { %s2449_s25 = sadd.s32 4294967295, %s2830_s24   ;;  %p2453_p0 = scmp.ge.s32.totalorder %s2830_s24, 1  ;;  %s2830_s24 = sphi %s2942_s24, %s27_s24  }
   0x4   : > { %p495_p1 = scmp.lt.s32.totalorder %s2830_s24, 3 }
   0x6   : > { %p496_p2 = pnand %p2453_p0, %p495_p1 }
   0x8   : > { %499 = sbr.rel (%p496_p2) target bundleno = 2785 (0xae1), region = 88 }
   0xf   : > { %v585_v0 = vld [vmem:[%s3785_s4] sm:$0xff]  ;;  %v3802_v2 = vmov 0   ;;  %p550_p3 = scmp.lt.s32.totalorder %s2449_s25, 1  ;;  %v586_v3 = vld [vmem:[%s3785_s4 + $0x8] sm:$0xff]  ;;  %v584_v5 = vld [vmem:[%s3784_s3 + $0x18] sm:$0xff]  ;;  %s3810_s28 = sld [smem:[#allocation7_spill]]  ;;  %v3801_v63 = vlaneseq }
  0x10   : > { %v581_v1 = vld [vmem:[%s3784_s3] sm:$0xff]  ;;  %2687 = vset.pattern.permute.xlu1 %v3802_v2  ;;  %2686 = vset.pattern.permute.xlu0 %v3802_v2  ;;  %v582_v4 = vld [vmem:[%s3784_s3 + $0x8] sm:$0xff]  ;;  %v583_v6 = vld [vmem:[%s3784_s3 + $0x10] sm:$0xff]  ;;  %s3813_s26 = sld [smem:[#allocation6_spill]]  ;;  %v2837_v20 = vmov 3   ;;  %v2838_v30 = vmov 1  }
  0x11   : > { %650 = vperm.xlu1 %2687, %v585_v0   ;;  %626 = vperm.xlu0 %2686, %v581_v1   ;;  %s3823_s25 = smov (!%p550_p3, %s2449_s25), 1  ;;  %v588_v9 = vld [vmem:[%s3785_s4 + $0x18] sm:$0xff]  ;;  %v587_v10 = vld [vmem:[%s3785_s4 + $0x10] sm:$0xff]  ;;  %v573_v12 = vld [vmem:[%s3783_s2] sm:$0xff]  ;;  %v2839_v32 = vmov 2   ;;  %v2840_v35 = vmov 4  }
  0x12   : > { %s2522_s23 = sshll.u32 %s3823_s25, 5  ;;  %v574_v13 = vld [vmem:[%s3783_s2 + $0x8] sm:$0xff]  ;;  %v3006_v17 = vld [vmem:[%s3786_s5] sm:$0xff]  ;;  %v575_v22 = vld [vmem:[%s3783_s2 + $0x10] sm:$0xff]  ;;  %v3806_v39 = vmov 5   ;;  %v3804_v42 = vmov 6  }
  0x13   : > { %s2976_s18 = scalar_lea.vmem %s3798_s17, %s2522_s23  ;;  %v3001_v16 = vld [vmem:[%s3786_s5 + $0x8] sm:$0xff]  ;;  %v3022_v23 = vld [vmem:[%s3786_s5 + $0x10] sm:$0xff]  ;;  %v576_v27 = vld [vmem:[%s3783_s2 + $0x18] sm:$0xff]  ;;  %v565_v1 = vand.u32 127, %v3801_v63  ;;  %s2844_s30 = smov 1   ;;  %vm936_vm1 = vcmask 261120  }
  0x14   : > { %v679_v34 = vld [vmem:[%s3786_s5 + $0x18] sm:$0xff]  ;;  %s2845_s19 = smov 3   ;;  %s2846_s1 = smov 2  }
  0x15   : > { %655 = vperm.xlu1 %2687, %v586_v3   ;;  %631 = vperm.xlu0 %2686, %v582_v4   ;;  %s557_s29 = scalar_lea.vmem %s3810_s28, %s3823_s25  ;;  %vm566_vm0 = vcmp.lt.s32.totalorder %v565_v1, 16  ;;  %s2847_s20 = smov 127   ;;  %v3213_v1 = vld [vmem:[%s3786_s5 + $0x20] sm:$0xff] }
  0x16   : > { %v2978_v7 = vld [vmem:[%s557_s29] sm:$0x1]  ;;  %s554_s27 = scalar_lea.vmem %s3813_s26, %s2522_s23  ;;  %s2848_s21 = smov 126  }
  0x17   : > { %3811 = vst [vmem:[#allocation4_spill] sm:$0xff] %v2978_v7  ;;  %v1672_v8 = vsub.f32 1.0, %v2978_v7  ;;  %v569_v14 = vld [vmem:[%s554_s27] sm:$0xff]  ;;  %v570_v15 = vld [vmem:[%s554_s27 + $0x8] sm:$0xff]  ;;  %v571_v21 = vld [vmem:[%s554_s27 + $0x10] sm:$0xff]  ;;  %s3799_s23 = smov 125  }
  0x18   : > { %v3008_v18 = vadd.f32 %v573_v12, %v569_v14  ;;  %v3010_v19 = vadd.f32 %v574_v13, %v570_v15  ;;  %v3024_v24 = vadd.f32 %v575_v22, %v571_v21  ;;  %v572_v26 = vld [vmem:[%s554_s27 + $0x18] sm:$0xff]  ;;  %s3817_s0 = smov 125  }
  0x19   : > { %641 = vperm.xlu1 %2687, %v584_v5   ;;  %636 = vperm.xlu0 %2686, %v583_v6   ;;  %v2987_v11 = vmul.f32 -1e+30, %v1672_v8  ;;  %v3034_v28 = vadd.f32 %v576_v27, %v572_v26 }
  0x1a   : > { %v589_v25 = vadd.f32 %v3010_v19, %v3008_v18 }
  0x1b   : > { %3812 = vst [vmem:[#allocation5_spill] sm:$0xff] %v2987_v11 }
  0x1c   : > { %v590_v29 = vadd.f32 %v589_v25, %v3024_v24 }
  0x1d   : > { %665 = vperm.xlu1 %2687, %v588_v9   ;;  %660 = vperm.xlu0 %2686, %v587_v10   ;;  %v2843_v9 = vmov 0.0  }
  0x1e   : > { %v591_v31 = vadd.f32 %v590_v29, %v3034_v28  ;;  %v3082_v10 = vsel %vm566_vm0, 1.0, %v2843_v9 }
  0x20   : > { %v592_v33 = vrot.slane %v591_v31, 4 }
  0x21   : > { %2689 = vset.pattern.permute.xlu1 %v2837_v20  ;;  %2688 = vset.pattern.permute.xlu0 %v2837_v20 }
  0x22   : > { %687 = vperm.xlu1 %2689, %v3001_v16   ;;  %682 = vperm.xlu0 %2688, %v3006_v17   ;;  %v593_v36 = vadd.f32 %v592_v33, %v591_v31 }
  0x24   : > { %v594_v37 = vrot.slane %v593_v36, 2 }
  0x26   : > { %2690 = vset.pattern.permute.xlu1 %v3802_v2  ;;  %692 = vperm.xlu0 %2688, %v3022_v23   ;;  %v595_v38 = vadd.f32 %v594_v37, %v593_v36 }
  0x27   : > { %713 = vperm.xlu1 %2690, %v3006_v17  }
  0x28   : > { %v596_v40 = vrot.slane %v595_v38, 1 }
  0x2a   : > { %2695 = vset.pattern.permute.xlu0 %v2838_v30  ;;  %v597_v41 = vadd.f32 %v596_v40, %v595_v38 }
  0x2b   : > { %2691 = vset.pattern.permute.xlu1 %v2838_v30  ;;  %753 = vperm.xlu0 %2695, %v3022_v23  }
  0x2c   : > { %745 = vperm.xlu1 %2691, %v3006_v17   ;;  %v599_v43 = vmul.f32 0.03125, %v597_v41 }
  0x2e   : > { %v600_v44 = vsub.f32 %v3008_v18, %v599_v43  ;;  %v601_v45 = vsub.f32 %v3010_v19, %v599_v43  ;;  %v602_v46 = vsub.f32 %v3024_v24, %v599_v43  ;;  %v603_v49 = vsub.f32 %v3034_v28, %v599_v43 }
  0x2f   : > { %2698 = vset.pattern.permute.xlu0 %v2839_v32 }
  0x30   : > { %749 = vperm.xlu1 %2691, %v3001_v16   ;;  %785 = vperm.xlu0 %2698, %v3022_v23   ;;  %v604_v47 = vmul.f32 %v600_v44, %v600_v44  ;;  %v605_v48 = vmul.f32 %v601_v45, %v601_v45  ;;  %v606_v50 = vmul.f32 %v602_v46, %v602_v46 }
  0x31   : > { %v607_v52 = vmul.f32 %v603_v49, %v603_v49 }
  0x32   : > { %v608_v51 = vadd.f32 %v605_v48, %v604_v47  ;;  %v2464_v47 = vld [vmem:[%s3784_s3 + $0x28] sm:$0xff] }
  0x34   : > { %2692 = vset.pattern.permute.xlu1 %v2837_v20  ;;  %2699 = vset.pattern.permute.xlu0 %v2840_v35  ;;  %v609_v53 = vadd.f32 %v608_v51, %v606_v50  ;;  %v2466_v51 = vld [vmem:[%s3784_s3 + $0x38] sm:$0xff] }
  0x35   : > { %697 = vperm.xlu1 %2692, %v679_v34   ;;  %813 = vperm.xlu0 %2699, %v3001_v16  }
  0x36   : > { %v610_v54 = vadd.f32 %v609_v53, %v607_v52  ;;  %v2732_v52 = vld [vmem:[%s3787_s6] sm:$0xff]   ;;  %v2470_v53 = vld [vmem:[%s3785_s4 + $0x38] sm:$0xff] }
  0x37   : > { %2570 = vmatprep.mubr.msk.bf16.mxu1 %vm936_vm1, %v2732_v52 }
  0x38   : > { %v611_v55 = vrot.slane %v610_v54, 4 }
  0x39   : > { %2693 = vset.pattern.permute.xlu1 %v3802_v2  ;;  %817 = vperm.xlu0 %2699, %v3022_v23  }
  0x3a   : > { %721 = vperm.xlu1 %2693, %v3022_v23   ;;  %v612_v56 = vadd.f32 %v611_v55, %v610_v54  ;;  %v903_v55 = vld [vmem:[%s3788_s7 + $0x8] sm:$0xff] }
  0x3c   : > { %v613_v57 = vrot.slane %v612_v56, 2 }
  0x3d   : > { %2702 = vset.pattern.permute.xlu0 %v3806_v39 }
  0x3e   : > { %2694 = vset.pattern.permute.xlu1 %v2839_v32  ;;  %845 = vperm.xlu0 %2702, %v3001_v16   ;;  %v614_v58 = vadd.f32 %v613_v57, %v612_v56 }
  0x3f   : > { %777 = vperm.xlu1 %2694, %v3006_v17  }
  0x40   : > { %v615_v59 = vrot.slane %v614_v58, 1 }
  0x42   : > { %849 = vperm.xlu0 %2702, %v3022_v23   ;;  %v616_v60 = vadd.f32 %v615_v59, %v614_v58  ;;  %v3190_v58 = vld [vmem:[%s3786_s5 + $0x28] sm:$0xff]  ;;  %v3197_v59 = vld [vmem:[%s3786_s5 + $0x38] sm:$0xff] }
  0x43   : > { %781 = vperm.xlu1 %2694, %v3001_v16  }
  0x44   : > { %v617_v61 = vmul.f32 0.03125, %v616_v60  ;;  %v904_v60 = vld [vmem:[%s3788_s7 + $0x10] sm:$0xff] }
  0x46   : > { %2705 = vset.pattern.permute.xlu0 %v3804_v42  ;;  %v618_v62 = vadd.f32 1e-05, %v617_v61 }
  0x47   : > { %2696 = vset.pattern.permute.xlu1 %v2838_v30  ;;  %877 = vperm.xlu0 %2705, %v3001_v16  }
  0x48   : > { %757 = vperm.xlu1 %2696, %v679_v34   ;;  %2742 = vrsqrt.f32 %v618_v62 }
  0x4b   : > { %885 = vperm.xlu0 %2705, %v679_v34  }
  0x4c   : > { %2697 = vset.pattern.permute.xlu1 %v2840_v35 }
  0x4d   : > { %809 = vperm.xlu1 %2697, %v3006_v17  }
  0x4f   : > { %2708 = vset.pattern.permute.xlu0 %v3802_v2 }
  0x50   : > { %717 = vperm.xlu0 %2708, %v3001_v16  }
  0x51   : > { %2700 = vset.pattern.permute.xlu1 %v2839_v32 }
  0x52   : > { %789 = vperm.xlu1 %2700, %v679_v34   ;;  %v2743_v0 = vpop.eup %2742 }
  0x53   : > { %v620_v3 = vmul.f32 %v2743_v0, %v600_v44  ;;  %v621_v8 = vmul.f32 %v2743_v0, %v601_v45  ;;  %v623_v21 = vmul.f32 %v2743_v0, %v603_v49  ;;  %v622_v27 = vmul.f32 %v2743_v0, %v602_v46  ;;  %v902_v44 = vld [vmem:[%s3788_s7] sm:$0xff]  ;;  %v905_v45 = vld [vmem:[%s3788_s7 + $0x18] sm:$0xff]  ;;  %v2468_v49 = vld [vmem:[%s3785_s4 + $0x28] sm:$0xff] }
  0x54   : > { %725 = vperm.xlu0 %2708, %v679_v34   ;;  %v2463_v0 = vld [vmem:[%s3784_s3 + $0x20] sm:$0xff] }
  0x56   : > { %2701 = vset.pattern.permute.xlu1 %v3806_v39 }
  0x57   : > { %841 = vperm.xlu1 %2701, %v3006_v17  }
  0x5b   : > { %2703 = vset.pattern.permute.xlu1 %v2840_v35 }
  0x5c   : > { %821 = vperm.xlu1 %2703, %v679_v34  }
  0x60   : > { %2704 = vset.pattern.permute.xlu1 %v3804_v42 }
  0x61   : > { %873 = vperm.xlu1 %2704, %v3006_v17  }
  0x65   : > { %2706 = vset.pattern.permute.xlu1 %v3806_v39 }
  0x66   : > { %853 = vperm.xlu1 %2706, %v679_v34  }
  0x6a   : > { %2707 = vset.pattern.permute.xlu1 %v3804_v42 }
  0x6b   : > { %881 = vperm.xlu1 %2707, %v3022_v23  }
  0x6f   : > { %2709 = vset.pattern.permute.xlu1 %v3802_v2 }
  0x90   : > { %v651_v4 = vpop.permute.xlu1 %650  ;;  %v627_v5 = vpop.permute.xlu0 %626 }
  0x91   : > { %v644_v6 = vmul.f32 %v627_v5, %v620_v3  ;;  %v2467_v5 = vld [vmem:[%s3785_s4 + $0x20] sm:$0xff] }
  0x93   : > { %v668_v12 = vadd.f32 %v651_v4, %v644_v6  ;;  %v2465_v6 = vld [vmem:[%s3784_s3 + $0x30] sm:$0xff] }
  0x94   : > { %v656_v13 = vpop.permute.xlu1 %655  ;;  %v632_v14 = vpop.permute.xlu0 %631 }
  0x95   : > { %v3085_v15 = vmul.f32 %v3082_v10, %v668_v12  ;;  %v645_v16 = vmul.f32 %v632_v14, %v621_v8  ;;  %v2469_v12 = vld [vmem:[%s3785_s4 + $0x30] sm:$0xff] }
  0x97   : > { %v669_v17 = vadd.f32 %v656_v13, %v645_v16  ;;  %768 = vrot.lane.b32.xlu0 %v3085_v15, %s2844_s30  ;;  %704 = vrot.lane.b32.xlu1 %v3085_v15, %s2845_s19  ;;  %v3244_v16 = vld [vmem:[%s3786_s5 + $0x30] sm:$0xff] }
  0x98   : > { %v642_v22 = vpop.permute.xlu1 %641  ;;  %v637_v23 = vpop.permute.xlu0 %636 }
  0x99   : > { %v3092_v25 = vmul.f32 %v3082_v10, %v669_v17  ;;  %v647_v26 = vmul.f32 %v642_v22, %v623_v21  ;;  %v646_v34 = vmul.f32 %v637_v23, %v622_v27 }
  0x9b   : > { %706 = vrot.lane.b32.xlu1 %v3092_v25, %s2845_s19 }
  0x9c   : > { %v666_v29 = vpop.permute.xlu1 %665  ;;  %v661_v33 = vpop.permute.xlu0 %660 }
  0x9d   : > { %v671_v31 = vadd.f32 %v666_v29, %v647_v26  ;;  %v670_v37 = vadd.f32 %v661_v33, %v646_v34 }
  0x9f   : > { %v3097_v36 = vmul.f32 %v3082_v10, %v671_v31  ;;  %736 = vrot.lane.b32.xlu1 %v3085_v15, %s2846_s1  ;;  %v3106_v38 = vmul.f32 %v3082_v10, %v670_v37 }
  0xa1   : > { %742 = vrot.lane.b32.xlu0 %v3097_v36, %s2846_s1  ;;  %v3118_v40 = vpop.permute.xlu1 %687  ;;  %v3183_v56 = vpop.permute.xlu0 %682 }
  0xa2   : > { %v701_v11 = vmul.f32 %v3118_v40, %v3092_v25 }
  0xa3   : > { %738 = vrot.lane.b32.xlu1 %v3092_v25, %s2846_s1 }
  0xa5   : > { %802 = vrot.lane.b32.xlu0 %v3092_v25, %s2847_s20  ;;  %v3205_v62 = vpop.permute.xlu0 %692 }
  0xa6   : > { %v3124_v41 = vpop.permute.xlu1 %713 }
  0xa7   : > { %708 = vrot.lane.b32.xlu1 %v3106_v38, %s2845_s19 }
  0xa9   : > { %832 = vrot.lane.b32.xlu0 %v3085_v15, %s2848_s21 }
  0xaa   : > { %v3216_v3 = vpop.permute.xlu0 %753 }
  0xab   : > { %710 = vrot.lane.b32.xlu1 %v3097_v36, %s2845_s19  ;;  %v3132_v43 = vpop.permute.xlu1 %745 }
  0xad   : > { %804 = vrot.lane.b32.xlu0 %v3106_v38, %s2847_s20 }
  0xaf   : > { %770 = vrot.lane.b32.xlu1 %v3092_v25, %s2844_s30  ;;  %v3144_v46 = vpop.permute.xlu1 %749  ;;  %v3228_v8 = vpop.permute.xlu0 %785 }
  0xb1   : > { %864 = vrot.lane.b32.xlu0 %v3085_v15, %s3799_s23 }
  0xb3   : > { %740 = vrot.lane.b32.xlu1 %v3106_v38, %s2846_s1 }
  0xb4   : > { %v3153_v48 = vpop.permute.xlu1 %697  ;;  %v3237_v13 = vpop.permute.xlu0 %813 }
  0xb5   : > { %836 = vrot.lane.b32.xlu0 %v3106_v38, %s2848_s21 }
  0xb7   : > { %800 = vrot.lane.b32.xlu1 %v3085_v15, %s2847_s20 }
  0xb8   : > { %v3250_v17 = vpop.permute.xlu0 %817 }
  0xb9   : > { %868 = vrot.lane.b32.xlu0 %v3106_v38, %s3799_s23  ;;  %v3160_v50 = vpop.permute.xlu1 %721 }
  0xbb   : > { %772 = vrot.lane.b32.xlu1 %v3106_v38, %s2844_s30 }
  0xbd   : > { %908 = vperm.xlu0 %2708, %v902_v44   ;;  %v3259_v22 = vpop.permute.xlu0 %845 }
  0xbe   : > { %v3175_v54 = vpop.permute.xlu1 %777 }
  0xbf   : > { %774 = vrot.lane.b32.xlu1 %v3097_v36, %s2844_s30 }
  0xc1   : > { %923 = vperm.xlu0 %2708, %v905_v45   ;;  %v3265_v26 = vpop.permute.xlu0 %849 }
  0xc2   : > { %v3185_v57 = vpop.permute.xlu1 %781 }
  0xc3   : > { %834 = vrot.lane.b32.xlu1 %v3092_v25, %s2848_s21 }
  0xc5   : > { %1051 = vperm.xlu0 %2708, %v2464_v47  }
  0xc6   : > { %v3274_v29 = vpop.permute.xlu0 %877 }
  0xc7   : > { %806 = vrot.lane.b32.xlu1 %v3097_v36, %s2847_s20  ;;  %v3202_v61 = vpop.permute.xlu1 %757 }
  0xc9   : > { %1075 = vperm.xlu0 %2708, %v2468_v49  }
  0xca   : > { %v3283_v33 = vpop.permute.xlu0 %885 }
  0xcb   : > { %866 = vrot.lane.b32.xlu1 %v3092_v25, %s3799_s23  ;;  %v702_v25 = vmul.f32 %v3205_v62, %v3106_v38 }
  0xcc   : > { %v3218_v4 = vpop.permute.xlu1 %809 }
  0xcd   : > { %1061 = vperm.xlu0 %2708, %v2466_v51  }
  0xcf   : > { %838 = vrot.lane.b32.xlu1 %v3097_v36, %s2848_s21  ;;  %v718_v37 = vpop.permute.xlu0 %717 }
  0xd1   : > { %1085 = vperm.xlu0 %2708, %v2470_v53   ;;  %v3230_v9 = vpop.permute.xlu1 %789 }
  0xd3   : > { %870 = vrot.lane.b32.xlu1 %v3097_v36, %s3799_s23  ;;  %v726_v45 = vpop.permute.xlu0 %725 }
  0xd5   : > { %2711 = vset.pattern.permute.xlu0 %v2837_v20 }
  0xd6   : > { %1108 = vperm.xlu0 %2711, %v3190_v58   ;;  %v3239_v14 = vpop.permute.xlu1 %841 }
  0xd7   : > { %913 = vperm.xlu1 %2709, %v903_v55  }
  0xda   : > { %1118 = vperm.xlu0 %2711, %v3197_v59  }
  0xdb   : > { %918 = vperm.xlu1 %2709, %v904_v60   ;;  %v3252_v21 = vpop.permute.xlu1 %821 }
  0xde   : > { %2715 = vset.pattern.permute.xlu0 %v2838_v30 }
  0xdf   : > { %1046 = vperm.xlu1 %2709, %v2463_v0   ;;  %1166 = vperm.xlu0 %2715, %v3213_v1  }
  0xe0   : > { %v3261_v23 = vpop.permute.xlu1 %873 }
  0xe3   : > { %1070 = vperm.xlu1 %2709, %v2467_v5   ;;  %1178 = vperm.xlu0 %2715, %v3197_v59  }
  0xe5   : > { %v3267_v27 = vpop.permute.xlu1 %853 }
  0xe7   : > { %1056 = vperm.xlu1 %2709, %v2465_v6   ;;  %2719 = vset.pattern.permute.xlu0 %v2839_v32 }
  0xe8   : > { %1198 = vperm.xlu0 %2719, %v3213_v1  }
  0xea   : > { %v3276_v31 = vpop.permute.xlu1 %881 }
  0xeb   : > { %1080 = vperm.xlu1 %2709, %v2469_v12  }
  0xec   : > { %1206 = vperm.xlu0 %2719, %v3244_v16  }
  0xef   : > { %2710 = vset.pattern.permute.xlu1 %v2837_v20 }
  0xf0   : > { %1103 = vperm.xlu1 %2710, %v3213_v1   ;;  %2723 = vset.pattern.permute.xlu0 %v2840_v35 }
  0xf1   : > { %1238 = vperm.xlu0 %2723, %v3244_v16  }
  0xf4   : > { %2712 = vset.pattern.permute.xlu1 %v3802_v2 }
  0xf5   : > { %1134 = vperm.xlu1 %2712, %v3213_v1   ;;  %2724 = vset.pattern.permute.xlu0 %v3806_v39 }
  0xf6   : > { %1266 = vperm.xlu0 %2724, %v3190_v58  }
  0xf9   : > { %1138 = vperm.xlu1 %2712, %v3190_v58  }
  0xfa   : > { %1270 = vperm.xlu0 %2724, %v3244_v16  }
  0xfd   : > { %2713 = vset.pattern.permute.xlu1 %v2838_v30 }
  0xfe   : > { %1170 = vperm.xlu1 %2713, %v3190_v58   ;;  %2727 = vset.pattern.permute.xlu0 %v3804_v42 }
  0xff   : > { %1298 = vperm.xlu0 %2727, %v3190_v58  }
 0x102   : > { %2714 = vset.pattern.permute.xlu1 %v2837_v20 }
 0x103   : > { %1113 = vperm.xlu1 %2714, %v3244_v16   ;;  %1306 = vperm.xlu0 %2727, %v3197_v59  }
 0x107   : > { %2716 = vset.pattern.permute.xlu1 %v3802_v2  ;;  %2730 = vset.pattern.permute.xlu0 %v3802_v2 }
 0x108   : > { %1142 = vperm.xlu1 %2716, %v3244_v16  }
 0x109   : > { %v705_v34 = vpop.permute.xlu1 %704  ;;  %v769_v51 = vpop.permute.xlu0 %768 }
 0x10a   : > { %v728_v6 = vmul.f32 %v3124_v41, %v705_v34  ;;  %v3814_v34 = vmov 6  }
 0x10c   : > { %1146 = vperm.xlu1 %2716, %v3197_v59  }
 0x10d   : > { %v707_v20 = vpop.permute.xlu1 %706 }
 0x10e   : > { %v729_v2 = vmul.f32 %v718_v37, %v707_v20 }
 0x110   : > { %2717 = vset.pattern.permute.xlu1 %v2839_v32 }
 0x111   : > { %v737_v44 = vpop.permute.xlu1 %736  ;;  %1202 = vperm.xlu1 %2717, %v3190_v58  }
 0x113   : > { %v743_v53 = vpop.permute.xlu0 %742 }
 0x115   : > { %v739_v47 = vpop.permute.xlu1 %738  ;;  %2718 = vset.pattern.permute.xlu1 %v2838_v30 }
 0x116   : > { %1174 = vperm.xlu1 %2718, %v3244_v16   ;;  %v761_v41 = vmul.f32 %v3144_v46, %v739_v47 }
 0x117   : > { %v803_v60 = vpop.permute.xlu0 %802 }
 0x118   : > { %v825_v38 = vmul.f32 %v3237_v13, %v803_v60 }
 0x119   : > { %v709_v49 = vpop.permute.xlu1 %708 }
 0x11a   : > { %2720 = vset.pattern.permute.xlu1 %v2840_v35 }
 0x11b   : > { %1230 = vperm.xlu1 %2720, %v3213_v1   ;;  %v833_v5 = vpop.permute.xlu0 %832 }
 0x11c   : > { %v856_v62 = vmul.f32 %v3239_v14, %v833_v5 }
 0x11d   : > { %v711_v52 = vpop.permute.xlu1 %710 }
 0x11f   : > { %1234 = vperm.xlu1 %2720, %v3190_v58   ;;  %v700_v58 = vmul.f32 %v3183_v56, %v3085_v15  ;;  %v805_v42 = vpop.permute.xlu0 %804  ;;  %v733_v15 = vadd.f32 %v729_v2, %v701_v11 }
 0x121   : > { %v771_v55 = vpop.permute.xlu1 %770  ;;  %v732_v63 = vadd.f32 %v728_v6, %v700_v58 }
 0x122   : > { %v793_v56 = vmul.f32 %v3185_v57, %v771_v55  ;;  %v703_v57 = vmul.f32 %v3153_v48, %v3097_v36 }
 0x123   : > { %2721 = vset.pattern.permute.xlu1 %v2839_v32  ;;  %v760_v32 = vmul.f32 %v3132_v43, %v737_v44  ;;  %v730_v43 = vmul.f32 %v3160_v50, %v709_v49  ;;  %v731_v44 = vmul.f32 %v726_v45, %v711_v52  ;;  %v865_v47 = vpop.permute.xlu0 %864 }
 0x124   : > { %1210 = vperm.xlu1 %2721, %v3197_v59   ;;  %v888_v48 = vmul.f32 %v3261_v23, %v865_v47 }
 0x125   : > { %v741_v0 = vpop.permute.xlu1 %740  ;;  %v764_v7 = vadd.f32 %v760_v32, %v732_v63  ;;  %v765_v63 = vadd.f32 %v761_v41, %v733_v15  ;;  %v735_v45 = vadd.f32 %v731_v44, %v703_v57 }
 0x126   : > { %v762_v40 = vmul.f32 %v3216_v3, %v741_v0 }
 0x127   : > { %v797_v2 = vadd.f32 %v793_v56, %v765_v63  ;;  %v837_v55 = vpop.permute.xlu0 %836 }
 0x128   : > { %2722 = vset.pattern.permute.xlu1 %v3806_v39 }
 0x129   : > { %v801_v30 = vpop.permute.xlu1 %800  ;;  %1262 = vperm.xlu1 %2722, %v3213_v1  }
 0x12a   : > { %v824_v20 = vmul.f32 %v3218_v4, %v801_v30 }
 0x12d   : > { %v773_v12 = vpop.permute.xlu1 %772  ;;  %2725 = vset.pattern.permute.xlu1 %v2840_v35  ;;  %v792_v35 = vmul.f32 %v3175_v54, %v769_v51  ;;  %v3815_v54 = vmov 5   ;;  %v829_v51 = vadd.f32 %v825_v38, %v797_v2 }
 0x12e   : > { %1242 = vperm.xlu1 %2725, %v3197_v59   ;;  %v794_v50 = vmul.f32 %v3228_v8, %v773_v12  ;;  %v763_v8 = vmul.f32 %v3202_v61, %v743_v53  ;;  %v3816_v53 = vmov 0   ;;  %v869_v12 = vpop.permute.xlu0 %868 }
 0x12f   : > { %v796_v46 = vadd.f32 %v792_v35, %v764_v7  ;;  %v890_v58 = vmul.f32 %v3276_v31, %v869_v12 }
 0x130   : > { %v767_v60 = vadd.f32 %v763_v8, %v735_v45 }
 0x131   : > { %v775_v39 = vpop.permute.xlu1 %774  ;;  %v828_v11 = vadd.f32 %v824_v20, %v796_v46 }
 0x132   : > { %2726 = vset.pattern.permute.xlu1 %v3814_v34  ;;  %v795_v13 = vmul.f32 %v3230_v9, %v775_v39 }
 0x133   : > { %1294 = vperm.xlu1 %2726, %v3213_v1   ;;  %v734_v1 = vadd.f32 %v730_v43, %v702_v25  ;;  %v860_v52 = vadd.f32 %v856_v62, %v828_v11 }
 0x135   : > { %v835_v37 = vpop.permute.xlu1 %834  ;;  %v766_v7 = vadd.f32 %v762_v40, %v734_v1  ;;  %v892_v6 = vadd.f32 %v888_v48, %v860_v52 }
 0x136   : > { %v857_v3 = vmul.f32 %v3259_v22, %v835_v37 }
 0x137   : > { %2728 = vset.pattern.permute.xlu1 %v3815_v54  ;;  %v798_v49 = vadd.f32 %v794_v50, %v766_v7 }
 0x138   : > { %1274 = vperm.xlu1 %2728, %v3197_v59   ;;  %v826_v59 = vmul.f32 %v3250_v17, %v805_v42  ;;  %v861_v14 = vadd.f32 %v857_v3, %v829_v51  ;;  %v858_v42 = vmul.f32 %v3265_v26, %v837_v55  ;;  %v799_v17 = vadd.f32 %v795_v13, %v767_v60  ;;  %v2733_v26 = vld [vmem:[%s3787_s6 + $0x8] sm:$0xff]  }
 0x139   : > { %v807_v4 = vpop.permute.xlu1 %806 }
 0x13a   : > { %v830_v0 = vadd.f32 %v826_v59, %v798_v49  ;;  %v827_v30 = vmul.f32 %v3252_v21, %v807_v4 }
 0x13c   : > { %2729 = vset.pattern.permute.xlu1 %v3814_v34  ;;  %v862_v39 = vadd.f32 %v858_v42, %v830_v0  ;;  %v831_v9 = vadd.f32 %v827_v30, %v799_v17  ;;  %v909_v15 = vpop.permute.xlu0 %908 }
 0x13d   : > { %v867_v36 = vpop.permute.xlu1 %866  ;;  %1302 = vperm.xlu1 %2729, %v3244_v16  }
 0x13e   : > { %v889_v22 = vmul.f32 %v3274_v29, %v867_v36  ;;  %v894_v34 = vadd.f32 %v890_v58, %v862_v39 }
 0x140   : > { %v893_v5 = vadd.f32 %v889_v22, %v861_v14 }
 0x141   : > { %v839_v61 = vpop.permute.xlu1 %838  ;;  %2731 = vset.pattern.permute.xlu1 %v3816_v53 }
 0x142   : > { %v859_v16 = vmul.f32 %v3267_v27, %v839_v61  ;;  %v900_v23 = vpack.c.bf16 %v893_v5, %v892_v6 }
 0x144   : > { %2566 = vmatprep.subr.bf16.mxu1 %v900_v23  ;;  %v863_v21 = vadd.f32 %v859_v16, %v831_v9 }
 0x145   : > { %v871_v29 = vpop.permute.xlu1 %870  ;;  %2567 = vmatpush3.bf16.msra.mxu1 %v900_v23 }
 0x146   : > { %v891_v32 = vmul.f32 %v3283_v33, %v871_v29  ;;  %v924_v33 = vpop.permute.xlu0 %923 }
 0x148   : > { %v895_v41 = vadd.f32 %v891_v32, %v863_v21 }
 0x14a   : > { %v901_v35 = vpack.c.bf16 %v895_v41, %v894_v34  ;;  %v1052_v17 = vpop.permute.xlu0 %1051 }
 0x14c   : > { %2568 = vmatprep.subr.bf16.mxu1 %v901_v35 }
 0x14d   : > { %2569 = vmatpush3.bf16.msra.mxu1 %v901_v35 }
 0x14e   : > { %v1076_v23 = vpop.permute.xlu0 %1075 }
 0x150   : > { %2571 = vmatmul.mubr.msk.bf16.vlgmr.msra.gmra.mrb[0].mxu1 %vm936_vm1, %v2733_v26 }
 0x152   : > { %v1062_v41 = vpop.permute.xlu0 %1061 }
 0x156   : > { %v914_v27 = vpop.permute.xlu1 %913 }
 0x15a   : > { %v919_v56 = vpop.permute.xlu1 %918 }
 0x15e   : > { %v1047_v16 = vpop.permute.xlu1 %1046 }
 0x162   : > { %v1071_v29 = vpop.permute.xlu1 %1070 }
 0x223   : > { %v2572_v43 = vpop.f32.mrb[0].mxu1 }
 0x224   : > { %v977_v20 = vpop.f32.mrb[1].mxu1  ;;  %v986_v31 = vadd.f32 %v2572_v43, %v919_v56  ;;  %v1057_v43 = vpop.permute.xlu1 %1056 }
 0x225   : > { %v978_v37 = vadd.f32 %v977_v20, %v909_v15  ;;  %v2573_v25 = vpop.f32.mrb[2].mxu1  ;;  %v1086_v20 = vpop.permute.xlu0 %1085 }
 0x226   : > { %v980_v63 = vpop.f32.mrb[3].mxu1  ;;  %v989_v46 = vadd.f32 %v2573_v25, %v924_v33  ;;  %v994_v47 = vmax.f32 %v986_v31, 0.0 }
 0x227   : > { %v992_v40 = vmax.f32 %v978_v37, 0.0  ;;  %v981_v44 = vadd.f32 %v980_v63, %v914_v27 }
 0x228   : > { %v995_v2 = vmax.f32 %v989_v46, 0.0  ;;  %v3347_v50 = vadd.f32 %v994_v47, %v3024_v24  ;;  %v1081_v25 = vpop.permute.xlu1 %1080 }
 0x229   : > { %v993_v54 = vmax.f32 %v981_v44, 0.0  ;;  %v3341_v1 = vadd.f32 %v992_v40, %v3008_v18 }
 0x22a   : > { %v3352_v4 = vadd.f32 %v995_v2, %v3034_v28 }
 0x22b   : > { %v3344_v11 = vadd.f32 %v993_v54, %v3010_v19 }
 0x22c   : > { %v3392_v46 = vpop.permute.xlu1 %1103 }
 0x22d   : > { %v1010_v57 = vadd.f32 %v3344_v11, %v3341_v1 }
 0x22f   : > { %v1011_v38 = vadd.f32 %v1010_v57, %v3347_v50  ;;  %v2734_v57 = vld [vmem:[%s3787_s6 + $0x10] sm:$0xff]  }
 0x230   : > { %2578 = vmatprep.mubr.msk.bf16.mxu1 %vm936_vm1, %v2734_v57 }
 0x231   : > { %v1012_v62 = vadd.f32 %v1011_v38, %v3352_v4 }
 0x233   : > { %v1013_v7 = vrot.slane %v1012_v62, 4 }
 0x235   : > { %v1014_v18 = vadd.f32 %v1013_v7, %v1012_v62  ;;  %v2479_v62 = vld [vmem:[%s3788_s7 + $0x20] sm:$0xff]  ;;  %v3439_v7 = vpop.permute.xlu0 %1108 }
 0x237   : > { %v1015_v3 = vrot.slane %v1014_v18, 2 }
 0x239   : > { %v1016_v45 = vadd.f32 %v1015_v3, %v1014_v18  ;;  %v2482_v18 = vld [vmem:[%s3788_s7 + $0x38] sm:$0xff] }
 0x23b   : > { %v1017_v49 = vrot.slane %v1016_v45, 1 }
 0x23d   : > { %v1018_v19 = vadd.f32 %v1017_v49, %v1016_v45  ;;  %v2480_v45 = vld [vmem:[%s3788_s7 + $0x28] sm:$0xff] }
 0x23e   : > { %v1427_v49 = vld [vmem:[%s3789_s8 + $0x8] sm:$0xff] }
 0x23f   : > { %v1019_v51 = vmul.f32 0.03125, %v1018_v19  ;;  %v3454_v19 = vpop.permute.xlu0 %1118 }
 0x241   : > { %v1020_v24 = vsub.f32 %v3341_v1, %v1019_v51  ;;  %v1021_v52 = vsub.f32 %v3344_v11, %v1019_v51  ;;  %v1022_v8 = vsub.f32 %v3347_v50, %v1019_v51  ;;  %v1023_v28 = vsub.f32 %v3352_v4, %v1019_v51  ;;  %v2481_v51 = vld [vmem:[%s3788_s7 + $0x30] sm:$0xff] }
 0x243   : > { %v1024_v59 = vmul.f32 %v1020_v24, %v1020_v24  ;;  %v1025_v55 = vmul.f32 %v1021_v52, %v1021_v52  ;;  %v1026_v36 = vmul.f32 %v1022_v8, %v1022_v8  ;;  %v1027_v13 = vmul.f32 %v1023_v28, %v1023_v28 }
 0x245   : > { %v1028_v48 = vadd.f32 %v1025_v55, %v1024_v59  ;;  %v1429_v59 = vld [vmem:[%s3789_s8 + $0x18] sm:$0xff] }
 0x247   : > { %v1029_v14 = vadd.f32 %v1028_v48, %v1026_v36  ;;  %v1430_v36 = vld [vmem:[%s3790_s9] sm:$0xff] }
 0x249   : > { %v1030_v22 = vadd.f32 %v1029_v14, %v1027_v13  ;;  %v1433_v13 = vld [vmem:[%s3790_s9 + $0x18] sm:$0xff]  ;;  %v1428_v14 = vld [vmem:[%s3789_s8 + $0x10] sm:$0xff] }
 0x24b   : > { %v1031_v60 = vrot.slane %v1030_v22, 4 }
 0x24d   : > { %v1032_v0 = vadd.f32 %v1031_v60, %v1030_v22 }
 0x24f   : > { %v1033_v30 = vrot.slane %v1032_v0, 2 }
 0x251   : > { %v1034_v5 = vadd.f32 %v1033_v30, %v1032_v0  ;;  %v1432_v0 = vld [vmem:[%s3790_s9 + $0x10] sm:$0xff] }
 0x253   : > { %v1035_v6 = vrot.slane %v1034_v5, 1 }
 0x255   : > { %v1036_v61 = vadd.f32 %v1035_v6, %v1034_v5 }
 0x257   : > { %v1037_v53 = vmul.f32 0.03125, %v1036_v61 }
 0x259   : > { %v1038_v42 = vadd.f32 1e-05, %v1037_v53 }
 0x25b   : > { %2744 = vrsqrt.f32 %v1038_v42 }
 0x265   : > { %v2745_v12 = vpop.eup %2744 }
 0x266   : > { %v1040_v39 = vmul.f32 %v2745_v12, %v1020_v24  ;;  %v1041_v9 = vmul.f32 %v2745_v12, %v1021_v52  ;;  %v1043_v32 = vmul.f32 %v2745_v12, %v1023_v28  ;;  %v1042_v26 = vmul.f32 %v2745_v12, %v1022_v8  ;;  %v1431_v52 = vld [vmem:[%s3790_s9 + $0x8] sm:$0xff]  ;;  %v1167_v8 = vpop.permute.xlu0 %1166  ;;  %v1426_v28 = vld [vmem:[%s3789_s8] sm:$0xff] }
 0x268   : > { %v1064_v58 = vmul.f32 %v1047_v16, %v1040_v39  ;;  %v1065_v21 = vmul.f32 %v1052_v17, %v1041_v9  ;;  %v1067_v56 = vmul.f32 %v1062_v41, %v1043_v32  ;;  %v1066_v31 = vmul.f32 %v1057_v43, %v1042_v26 }
 0x26a   : > { %v1088_v34 = vadd.f32 %v1071_v29, %v1064_v58  ;;  %v1089_v35 = vadd.f32 %v1076_v23, %v1065_v21  ;;  %v1091_v37 = vadd.f32 %v1086_v20, %v1067_v56  ;;  %v1090_v33 = vadd.f32 %v1081_v25, %v1066_v31  ;;  %v3473_v48 = vpop.permute.xlu0 %1178 }
 0x26c   : > { %v3361_v27 = vmul.f32 %v3082_v10, %v1088_v34  ;;  %v3364_v15 = vmul.f32 %v3082_v10, %v1089_v35  ;;  %v3375_v63 = vmul.f32 %v3082_v10, %v1091_v37  ;;  %v3382_v40 = vmul.f32 %v3082_v10, %v1090_v33  ;;  %v3398_v10 = vpop.permute.xlu1 %1134 }
 0x26e   : > { %1127 = vrot.lane.b32.xlu1 %v3364_v15, %s2845_s19  ;;  %1125 = vrot.lane.b32.xlu0 %v3361_v27, %s2845_s19  ;;  %v1199_v60 = vpop.permute.xlu0 %1198  ;;  %v1121_v20 = vmul.f32 %v3392_v46, %v3361_v27 }
 0x270   : > { %v3408_v44 = vpop.permute.xlu1 %1138 }
 0x272   : > { %1157 = vrot.lane.b32.xlu1 %v3361_v27, %s2846_s1  ;;  %1189 = vrot.lane.b32.xlu0 %v3361_v27, %s2844_s30  ;;  %v1207_v5 = vpop.permute.xlu0 %1206 }
 0x274   : > { %v3414_v47 = vpop.permute.xlu1 %1170 }
 0x276   : > { %1159 = vrot.lane.b32.xlu1 %v3364_v15, %s2846_s1  ;;  %1163 = vrot.lane.b32.xlu0 %v3375_v63, %s2846_s1  ;;  %v1239_v61 = vpop.permute.xlu0 %1238 }
 0x278   : > { %v3420_v54 = vpop.permute.xlu1 %1113 }
 0x27a   : > { %1129 = vrot.lane.b32.xlu1 %v3382_v40, %s2845_s19  ;;  %1223 = vrot.lane.b32.xlu0 %v3364_v15, %s2847_s20  ;;  %v1267_v42 = vpop.permute.xlu0 %1266 }
 0x27c   : > { %v3424_v2 = vpop.permute.xlu1 %1142 }
 0x27e   : > { %1131 = vrot.lane.b32.xlu1 %v3375_v63, %s2845_s19  ;;  %1253 = vrot.lane.b32.xlu0 %v3361_v27, %s2848_s21  ;;  %v3488_v16 = vpop.permute.xlu0 %1270 }
 0x280   : > { %v3433_v38 = vpop.permute.xlu1 %1146 }
 0x282   : > { %1191 = vrot.lane.b32.xlu1 %v3364_v15, %s2844_s30  ;;  %1225 = vrot.lane.b32.xlu0 %v3382_v40, %s2847_s20  ;;  %v1299_v12 = vpop.permute.xlu0 %1298 }
 0x284   : > { %v3446_v3 = vpop.permute.xlu1 %1202 }
 0x286   : > { %1161 = vrot.lane.b32.xlu1 %v3382_v40, %s2846_s1  ;;  %1285 = vrot.lane.b32.xlu0 %v3361_v27, %s3817_s0  ;;  %v3494_v9 = vpop.permute.xlu0 %1306  ;;  %s3550_s1 = smov 0  }
 0x288   : > { %v3459_v24 = vpop.permute.xlu1 %1174 }
 0x28a   : > { %1221 = vrot.lane.b32.xlu1 %v3361_v27, %s2847_s20  ;;  %1257 = vrot.lane.b32.xlu0 %v3382_v40, %s2848_s21  ;;  %v1122_v27 = vmul.f32 %v3439_v7, %v3364_v15 }
 0x28c   : > { %v1231_v55 = vpop.permute.xlu1 %1230 }
 0x28e   : > { %1193 = vrot.lane.b32.xlu1 %v3382_v40, %s2844_s30  ;;  %1289 = vrot.lane.b32.xlu0 %v3382_v40, %s3817_s0 }
 0x290   : > { %v1235_v22 = vpop.permute.xlu1 %1234 }
 0x292   : > { %1195 = vrot.lane.b32.xlu1 %v3375_v63, %s2844_s30  ;;  %1331 = vperm.xlu0 %2730, %v2479_v62  }
 0x294   : > { %v3484_v30 = vpop.permute.xlu1 %1210 }
 0x296   : > { %1255 = vrot.lane.b32.xlu1 %v3364_v15, %s2848_s21  ;;  %1346 = vperm.xlu0 %2730, %v2482_v18  }
 0x298   : > { %v1263_v6 = vpop.permute.xlu1 %1262 }
 0x29a   : > { %1227 = vrot.lane.b32.xlu1 %v3375_v63, %s2847_s20  ;;  %1475 = vperm.xlu0 %2730, %v1427_v49  }
 0x29c   : > { %v3486_v53 = vpop.permute.xlu1 %1242 }
 0x29e   : > { %1287 = vrot.lane.b32.xlu1 %v3364_v15, %s3817_s0  ;;  %1499 = vperm.xlu0 %2730, %v1431_v52  }
 0x2a0   : > { %v1295_v17 = vpop.permute.xlu1 %1294 }
 0x2a2   : > { %1259 = vrot.lane.b32.xlu1 %v3375_v63, %s2848_s21  ;;  %1485 = vperm.xlu0 %2730, %v1429_v59  }
 0x2a4   : > { %v3490_v23 = vpop.permute.xlu1 %1274 }
 0x2a6   : > { %1291 = vrot.lane.b32.xlu1 %v3375_v63, %s3817_s0  ;;  %1509 = vperm.xlu0 %2730, %v1433_v13  }
 0x2a8   : > { %v3492_v39 = vpop.permute.xlu1 %1302 }
 0x2aa   : > { %1336 = vperm.xlu1 %2731, %v2480_v45  }
 0x2ae   : > { %1341 = vperm.xlu1 %2731, %v2481_v51  }
 0x2b2   : > { %1470 = vperm.xlu1 %2731, %v1426_v28  }
 0x2b6   : > { %1494 = vperm.xlu1 %2731, %v1430_v36  }
 0x2ba   : > { %1480 = vperm.xlu1 %2731, %v1428_v14  }
 0x2be   : > { %1504 = vperm.xlu1 %2731, %v1432_v0  }
 0x2e0   : > { %v1128_v29 = vpop.permute.xlu1 %1127  ;;  %v1126_v58 = vpop.permute.xlu0 %1125 }
 0x2e1   : > { %v1149_v43 = vmul.f32 %v3398_v10, %v1126_v58  ;;  %v1150_v10 = vmul.f32 %v3408_v44, %v1128_v29 }
 0x2e3   : > { %v1153_v25 = vadd.f32 %v1149_v43, %v1121_v20 }
 0x2e4   : > { %v1158_v21 = vpop.permute.xlu1 %1157  ;;  %v1190_v41 = vpop.permute.xlu0 %1189 }
 0x2e5   : > { %v1181_v31 = vmul.f32 %v1167_v8, %v1158_v21  ;;  %v1213_v62 = vmul.f32 %v1199_v60, %v1190_v41  ;;  %v1154_v8 = vadd.f32 %v1150_v10, %v1122_v27 }
 0x2e7   : > { %v1185_v57 = vadd.f32 %v1181_v31, %v1153_v25 }
 0x2e8   : > { %v1160_v32 = vpop.permute.xlu1 %1159  ;;  %v1164_v35 = vpop.permute.xlu0 %1163 }
 0x2e9   : > { %v1217_v49 = vadd.f32 %v1213_v62, %v1185_v57  ;;  %v1182_v46 = vmul.f32 %v3414_v47, %v1160_v32  ;;  %v1124_v47 = vmul.f32 %v3454_v19, %v3375_v63 }
 0x2ec   : > { %v1130_v34 = vpop.permute.xlu1 %1129  ;;  %v1224_v37 = vpop.permute.xlu0 %1223 }
 0x2ed   : > { %v1151_v60 = vmul.f32 %v3424_v2, %v1130_v34  ;;  %v1246_v2 = vmul.f32 %v1235_v22, %v1224_v37 }
 0x2f0   : > { %v1132_v26 = vpop.permute.xlu1 %1131  ;;  %v1254_v18 = vpop.permute.xlu0 %1253 }
 0x2f1   : > { %v1277_v52 = vmul.f32 %v1263_v6, %v1254_v18  ;;  %v1186_v6 = vadd.f32 %v1182_v46, %v1154_v8  ;;  %v1152_v44 = vmul.f32 %v3433_v38, %v1132_v26 }
 0x2f3   : > { %v1156_v34 = vadd.f32 %v1152_v44, %v1124_v47 }
 0x2f4   : > { %v1192_v56 = vpop.permute.xlu1 %1191  ;;  %v1226_v13 = vpop.permute.xlu0 %1225 }
 0x2f5   : > { %v1214_v0 = vmul.f32 %v3446_v3, %v1192_v56 }
 0x2f7   : > { %v1218_v43 = vadd.f32 %v1214_v0, %v1186_v6 }
 0x2f8   : > { %v1162_v33 = vpop.permute.xlu1 %1161  ;;  %v1286_v29 = vpop.permute.xlu0 %1285 }
 0x2f9   : > { %v1183_v21 = vmul.f32 %v3459_v24, %v1162_v33  ;;  %v1250_v20 = vadd.f32 %v1246_v2, %v1218_v43  ;;  %v1309_v38 = vmul.f32 %v1295_v17, %v1286_v29 }
 0x2fc   : > { %v1222_v45 = vpop.permute.xlu1 %1221  ;;  %v1258_v24 = vpop.permute.xlu0 %1257 }
 0x2fd   : > { %v1245_v51 = vmul.f32 %v1231_v55, %v1222_v45  ;;  %v1123_v55 = vmul.f32 %v3420_v54, %v3382_v40  ;;  %v1184_v40 = vmul.f32 %v3473_v48, %v1164_v35  ;;  %v1247_v54 = vmul.f32 %v1239_v61, %v1226_v13 }
 0x2fe   : > { %v1279_v37 = vmul.f32 %v3488_v16, %v1258_v24  ;;  %v2735_v16 = vld [vmem:[%s3787_s6 + $0x18] sm:$0xff]  }
 0x2ff   : > { %v1249_v28 = vadd.f32 %v1245_v51, %v1217_v49  ;;  %v1155_v41 = vadd.f32 %v1151_v60, %v1123_v55  ;;  %v1188_v33 = vadd.f32 %v1184_v40, %v1156_v34 }
 0x300   : > { %v1194_v59 = vpop.permute.xlu1 %1193  ;;  %v1290_v35 = vpop.permute.xlu0 %1289 }
 0x301   : > { %v1281_v36 = vadd.f32 %v1277_v52, %v1249_v28  ;;  %v1215_v15 = vmul.f32 %v1207_v5, %v1194_v59  ;;  %v1187_v32 = vadd.f32 %v1183_v21, %v1155_v41 }
 0x303   : > { %v1219_v56 = vadd.f32 %v1215_v15, %v1187_v32  ;;  %v1313_v22 = vadd.f32 %v1309_v38, %v1281_v36 }
 0x304   : > { %v1196_v14 = vpop.permute.xlu1 %1195 }
 0x305   : > { %v1216_v26 = vmul.f32 %v3484_v30, %v1196_v14  ;;  %v1251_v57 = vadd.f32 %v1247_v54, %v1219_v56 }
 0x307   : > { %v1220_v62 = vadd.f32 %v1216_v26, %v1188_v33  ;;  %v1283_v18 = vadd.f32 %v1279_v37, %v1251_v57 }
 0x308   : > { %v1256_v58 = vpop.permute.xlu1 %1255 }
 0x309   : > { %v1278_v3 = vmul.f32 %v1267_v42, %v1256_v58 }
 0x30b   : > { %v1282_v25 = vadd.f32 %v1278_v3, %v1250_v20 }
 0x30c   : > { %v1228_v7 = vpop.permute.xlu1 %1227 }
 0x30d   : > { %v1248_v63 = vmul.f32 %v3486_v53, %v1228_v7 }
 0x30f   : > { %v1252_v17 = vadd.f32 %v1248_v63, %v1220_v62 }
 0x310   : > { %v1288_v31 = vpop.permute.xlu1 %1287 }
 0x311   : > { %v1310_v5 = vmul.f32 %v1299_v12, %v1288_v31  ;;  %v1311_v12 = vmul.f32 %v3492_v39, %v1290_v35  ;;  %v1332_v28 = vpop.permute.xlu0 %1331 }
 0x313   : > { %v1314_v19 = vadd.f32 %v1310_v5, %v1282_v25  ;;  %v1315_v49 = vadd.f32 %v1311_v12, %v1283_v18 }
 0x314   : > { %v1260_v42 = vpop.permute.xlu1 %1259 }
 0x315   : > { %v1280_v48 = vmul.f32 %v3490_v23, %v1260_v42  ;;  %v1322_v61 = vpack.c.bf16 %v1314_v19, %v1313_v22  ;;  %v2736_v23 = vld [vmem:[%s3791_s10] sm:$0xff]   ;;  %v1347_v13 = vpop.permute.xlu0 %1346 }
 0x316   : > { %2586 = vmatprep.mubr.msk.bf16.mxu0 %vm936_vm1, %v2736_v23 }
 0x317   : > { %2574 = vmatprep.subr.bf16.mxu1 %v1322_v61  ;;  %v1284_v45 = vadd.f32 %v1280_v48, %v1252_v17 }
 0x318   : > { %v1292_v30 = vpop.permute.xlu1 %1291  ;;  %2575 = vmatpush3.bf16.msra.mxu1 %v1322_v61 }
 0x319   : > { %v1312_v53 = vmul.f32 %v3494_v9, %v1292_v30  ;;  %v1476_v37 = vpop.permute.xlu0 %1475 }
 0x31b   : > { %v1316_v51 = vadd.f32 %v1312_v53, %v1284_v45 }
 0x31d   : > { %v1323_v52 = vpack.c.bf16 %v1316_v51, %v1315_v49  ;;  %v1500_v35 = vpop.permute.xlu0 %1499 }
 0x31f   : > { %2576 = vmatprep.subr.bf16.mxu1 %v1323_v52 }
 0x320   : > { %2577 = vmatpush3.bf16.msra.mxu1 %v1323_v52 }
 0x321   : > { %v1486_v17 = vpop.permute.xlu0 %1485 }
 0x323   : > { %2579 = vmatmul.mubr.msk.bf16.vlgmr.msra.gmra.mrb[4].mxu1 %vm936_vm1, %v2735_v16 }
 0x329   : > { %v1337_v39 = vpop.permute.xlu1 %1336 }
 0x32d   : > { %v1342_v9 = vpop.permute.xlu1 %1341 }
 0x331   : > { %v1471_v42 = vpop.permute.xlu1 %1470 }
 0x335   : > { %v1495_v61 = vpop.permute.xlu1 %1494 }
 0x339   : > { %v1481_v18 = vpop.permute.xlu1 %1480 }
 0x3f6   : > { %v2580_v59 = vpop.f32.mrb[4].mxu1 }
 0x3f7   : > { %v1408_v36 = vadd.f32 %v2580_v59, %v1342_v9  ;;  %v1399_v10 = vpop.f32.mrb[5].mxu1 }
 0x3f8   : > { %v1400_v14 = vadd.f32 %v1399_v10, %v1332_v28  ;;  %v2581_v27 = vpop.f32.mrb[6].mxu1  ;;  %v1510_v28 = vpop.permute.xlu0 %1509 }
 0x3f9   : > { %v1416_v46 = vmax.f32 %v1408_v36, 0.0  ;;  %v1411_v8 = vadd.f32 %v2581_v27, %v1347_v13  ;;  %v1402_v60 = vpop.f32.mrb[7].mxu1  ;;  %v2737_v27 = vld [vmem:[%s3791_s10 + $0x8] sm:$0xff]  }
 0x3fa   : > { %v1414_v0 = vmax.f32 %v1400_v14, 0.0  ;;  %v1403_v58 = vadd.f32 %v1402_v60, %v1337_v39  ;;  %v1505_v39 = vpop.permute.xlu1 %1504  ;;  %v2740_v60 = vld [vmem:[%s3791_s10 + $0x20] sm:$0xff]  }
 0x3fb   : > { %v1420_v55 = vadd.f32 %v1416_v46, %v3347_v50  ;;  %v1417_v6 = vmax.f32 %v1411_v8, 0.0  ;;  %v2738_v46 = vld [vmem:[%s3791_s10 + $0x10] sm:$0xff]   ;;  %v2739_v8 = vld [vmem:[%s3791_s10 + $0x18] sm:$0xff]  }
 0x3fc   : > { %v1418_v21 = vadd.f32 %v1414_v0, %v3341_v1  ;;  %v1415_v44 = vmax.f32 %v1403_v58, 0.0  ;;  %v2741_v0 = vld [vmem:[%s3791_s10 + $0x28] sm:$0xff]  }
 0x3fd   : > { %1424 = vst [vmem:[#allocation3 + $0x10] sm:$0xff] %v1420_v55  ;;  %v1421_v29 = vadd.f32 %v1417_v6, %v3352_v4 }
 0x3fe   : > { %1422 = vst [vmem:[#allocation3] sm:$0xff] %v1418_v21  ;;  %v1419_v41 = vadd.f32 %v1415_v44, %v3344_v11 }
 0x3ff   : > { %1425 = vst [vmem:[#allocation3 + $0x18] sm:$0xff] %v1421_v29 }
 0x400   : > { %1423 = vst [vmem:[#allocation3 + $0x8] sm:$0xff] %v1419_v41  ;;  %v1434_v43 = vadd.f32 %v1419_v41, %v1418_v21 }
 0x402   : > { %v1435_v15 = vadd.f32 %v1434_v43, %v1420_v55 }
 0x404   : > { %v1436_v47 = vadd.f32 %v1435_v15, %v1421_v29 }
 0x406   : > { %v1437_v7 = vrot.slane %v1436_v47, 4 }
 0x408   : > { %v1438_v2 = vadd.f32 %v1437_v7, %v1436_v47 }
 0x40a   : > { %v1439_v32 = vrot.slane %v1438_v2, 2 }
 0x40c   : > { %v1440_v3 = vadd.f32 %v1439_v32, %v1438_v2 }
 0x40e   : > { %v1441_v50 = vrot.slane %v1440_v3, 1 }
 0x410   : > { %v1442_v34 = vadd.f32 %v1441_v50, %v1440_v3 }
 0x412   : > { %v1443_v56 = vmul.f32 0.03125, %v1442_v34 }
 0x414   : > { %v1444_v1 = vsub.f32 %v1418_v21, %v1443_v56  ;;  %v1445_v20 = vsub.f32 %v1419_v41, %v1443_v56  ;;  %v1446_v40 = vsub.f32 %v1420_v55, %v1443_v56  ;;  %v1447_v54 = vsub.f32 %v1421_v29, %v1443_v56 }
 0x416   : > { %v1448_v4 = vmul.f32 %v1444_v1, %v1444_v1  ;;  %v1449_v24 = vmul.f32 %v1445_v20, %v1445_v20  ;;  %v1450_v11 = vmul.f32 %v1446_v40, %v1446_v40  ;;  %v1451_v38 = vmul.f32 %v1447_v54, %v1447_v54 }
 0x418   : > { %v1452_v31 = vadd.f32 %v1449_v24, %v1448_v4 }
 0x41a   : > { %v1453_v26 = vadd.f32 %v1452_v31, %v1450_v11 }
 0x41c   : > { %v1454_v25 = vadd.f32 %v1453_v26, %v1451_v38 }
 0x41e   : > { %v1455_v5 = vrot.slane %v1454_v25, 4 }
 0x420   : > { %v1456_v33 = vadd.f32 %v1455_v5, %v1454_v25 }
 0x422   : > { %v1457_v57 = vrot.slane %v1456_v33, 2 }
 0x424   : > { %v1458_v63 = vadd.f32 %v1457_v57, %v1456_v33 }
 0x426   : > { %v1459_v19 = vrot.slane %v1458_v63, 1 }
 0x428   : > { %v1460_v22 = vadd.f32 %v1459_v19, %v1458_v63 }
 0x42a   : > { %v1461_v62 = vmul.f32 0.03125, %v1460_v22 }
 0x42c   : > { %v1462_v48 = vadd.f32 1e-05, %v1461_v62 }
 0x42e   : > { %2746 = vrsqrt.f32 %v1462_v48 }
 0x438   : > { %v2747_v30 = vpop.eup %2746 }
 0x439   : > { %v1466_v12 = vmul.f32 %v2747_v30, %v1446_v40  ;;  %v1467_v45 = vmul.f32 %v2747_v30, %v1447_v54  ;;  %v1464_v53 = vmul.f32 %v2747_v30, %v1444_v1  ;;  %v1465_v49 = vmul.f32 %v2747_v30, %v1445_v20 }
 0x43b   : > { %v1490_v51 = vmul.f32 %v1481_v18, %v1466_v12  ;;  %v1491_v52 = vmul.f32 %v1486_v17, %v1467_v45  ;;  %v1488_v16 = vmul.f32 %v1471_v42, %v1464_v53  ;;  %v1489_v23 = vmul.f32 %v1476_v37, %v1465_v49 }
 0x43d   : > { %v1514_v9 = vadd.f32 %v1505_v39, %v1490_v51  ;;  %v1515_v59 = vadd.f32 %v1510_v28, %v1491_v52  ;;  %v1512_v36 = vadd.f32 %v1495_v61, %v1488_v16  ;;  %v1513_v10 = vadd.f32 %v1500_v35, %v1489_v23 }
 0x43f   : > { %v1529_v13 = vpack.c.bf16 %v1515_v59, %v1514_v9  ;;  %v1528_v14 = vpack.c.bf16 %v1513_v10, %v1512_v36 }
 0x441   : > { %2582 = vmatprep.subr.bf16.mxu0 %v1528_v14 }
 0x442   : > { %2583 = vmatpush3.bf16.msra.mxu0 %v1528_v14 }
 0x443   : > { %2584 = vmatprep.subr.bf16.mxu0 %v1529_v13 }
 0x446   : > { %2585 = vmatpush3.bf16.msra.mxu0 %v1529_v13 }
 0x449   : > { %2587 = vmatmul.mubr.msk.bf16.vlgmr.msra.gmra.mrb[0].mxu0 %vm936_vm1, %v2737_v27 }
 0x44a   : > { %2590 = vmatprep.mubr.msk.bf16.mxu0 %vm936_vm1, %v2738_v46 }
 0x451   : > { %2591 = vmatmul.mubr.msk.bf16.gmra.mrb[4].mxu0 %vm936_vm1, %v2739_v8 }
 0x452   : > { %2594 = vmatprep.mubr.msk.bf16.mxu0 %vm936_vm1, %v2740_v60 }
 0x459   : > { %2595 = vmatmul.mubr.msk.bf16.gmra.mrb[8].mxu0 %vm936_vm1, %v2741_v0 }
 0x51c   : > { %v2588_v58 = vpop.f32.mrb[0].mxu0 }
 0x51d   : > { %1661 = vst [vmem:[#allocation2 + $0x10] sm:$0xff] %v2588_v58  ;;  %v1612_v55 = vpop.f32.mrb[1].mxu0 }
 0x51e   : > { %1659 = vst [vmem:[#allocation2] sm:$0xff] %v1612_v55  ;;  %v2589_v6 = vpop.f32.mrb[2].mxu0 }
 0x51f   : > { %1662 = vst [vmem:[#allocation2 + $0x18] sm:$0xff] %v2589_v6  ;;  %v1615_v21 = vpop.f32.mrb[3].mxu0 }
 0x520   : > { %1660 = vst [vmem:[#allocation2 + $0x8] sm:$0xff] %v1615_v21 }
 0x524   : > { %v2592_v44 = vpop.f32.mrb[4].mxu0 }
 0x525   : > { %1665 = vst [vmem:[#allocation2 + $0x30] sm:$0xff] %v2592_v44  ;;  %v1628_v29 = vpop.f32.mrb[5].mxu0 }
 0x526   : > { %1663 = vst [vmem:[#allocation2 + $0x20] sm:$0xff] %v1628_v29  ;;  %v2593_v41 = vpop.f32.mrb[6].mxu0 }
 0x527   : > { %1666 = vst [vmem:[#allocation2 + $0x38] sm:$0xff] %v2593_v41  ;;  %v1631_v43 = vpop.f32.mrb[7].mxu0 }
 0x528   : > { %1664 = vst [vmem:[#allocation2 + $0x28] sm:$0xff] %v1631_v43 }
 0x52c   : > { %v2596_v15 = vpop.f32.mrb[8].mxu0 }
 0x52d   : > { %1669 = vst [vmem:[#allocation2 + $0x50] sm:$0xff] %v2596_v15  ;;  %v1644_v47 = vpop.f32.mrb[9].mxu0 }
 0x52e   : > { %1667 = vst [vmem:[#allocation2 + $0x40] sm:$0xff] %v1644_v47  ;;  %v2597_v7 = vpop.f32.mrb[10].mxu0 }
 0x52f   : > { %1670 = vst [vmem:[#allocation2 + $0x58] sm:$0xff] %v2597_v7  ;;  %v1647_v2 = vpop.f32.mrb[11].mxu0 }
 0x530   : > { %1668 = vst [vmem:[#allocation2 + $0x48] sm:$0xff] %v1647_v2 }
 0x531 LB: >> { %s2499_s30 = sshll.u32 %s2834_s1, 3  ;;  %vm1732_vm2 = vcmask 1043456   ;;  %vm1707_vm3 = vcmask 64512   ;;  %v3818_v38 = vlaneseq  ;;  %v3819_v5 = vld [vmem:[#allocation4_spill] sm:$0xff]  ;;  %v3820_v63 = vld [vmem:[#allocation5_spill] sm:$0xff]  ;;  %vm2851_vm4 = vmmov 0   ;;  %s2834_s1 = sphi %s3550_s1, %s1679_s1  }
 0x532   : >> { %s3558_s23 = scalar_lea.vmem [#allocation2], %s2499_s30  ;;  %s2070_s20 = scalar_lea.vmem [#allocation3], %s2499_s30 }
 0x533   : >> { %v1835_v26 = vshrl.u32 %v3818_v38, 7  ;;  %s1679_s1 = sadd.s32 1, %s2834_s1  }
 0x534   : >> { %p1676_p4 = scmp.ge.s32.totalorder %s1679_s1, 4  }
 0x535   : >> { %v1836_v25 = vsub.s32 0, %v1835_v26 }
 0x537   : >> { %v1682_v32 = vld [vmem:[%s3558_s23] sm:$0xff]  ;;  %v1837_v33 = vrot.slane %v3819_v5, %v1836_v25  ;;  %v1859_v19 = vrot.slane %v3820_v63, %v1836_v25 }
 0x538   : >> { %v2501_v3 = vld [vmem:[%s3558_s23 + $0x20] sm:$0xff]  ;;  %v1689_v50 = vpack.c.bf16 %v1682_v32, %v1682_v32 }
 0x539   : >> { %v1690_v34 = vpack.c.bf16 %v2501_v3, %v2501_v3 }
 0x53a   : >> { %1691 = vxpose.xlu0.c.b16.start.end [1/1] (short) %v1689_v50, 128 }
 0x53b   : >> { %2652 = vmatprep.subr.msk.bf16.mxu0 %vm1732_vm2, %v1690_v34  ;;  %v1734_v56 = vsel %vm1732_vm2, %v1690_v34, 0 }
 0x53c   : >> { %2599 = vmatpush3.bf16.msra.mxu0 %v1734_v56 }
 0x5a0   : >> { %v1699_v1 = vpop.trf.xlu0 }
 0x5a1   : >> { %2600 = vmatprep.mubr.msk.bf16.mxu0 %vm1707_vm3, %v1699_v1 }
 0x5a4   : >> { %v1700_v20 = vpop.trf.xlu0 }
 0x5a5   : >> { %2601 = vmatmul.mubr.msk.bf16.vlgmr.msra.gmra.mrb[0].mxu0 %vm1707_vm3, %v1700_v20 }
 0x5a8   : >> { %v1701_v40 = vpop.trf.xlu0 }
 0x5a9   : >> { %2604 = vmatprep.mubr.msk.bf16.mxu0 %vm1707_vm3, %v1701_v40 }
 0x5ac   : >> { %v1702_v54 = vpop.trf.xlu0 }
 0x5ad   : >> { %2605 = vmatmul.mubr.msk.bf16.gmra.mrb[4].mxu0 %vm1707_vm3, %v1702_v54 }
 0x5b0   : >> { %v1703_v4 = vpop.trf.xlu0 }
 0x5b1   : >> { %2608 = vmatprep.mubr.msk.bf16.mxu0 %vm1707_vm3, %v1703_v4 }
 0x5b4   : >> { %v1704_v24 = vpop.trf.xlu0 }
 0x5b5   : >> { %2609 = vmatmul.mubr.msk.bf16.gmra.mrb[8].mxu0 %vm1707_vm3, %v1704_v24 }
 0x5b8   : >> { %v1705_v31 = vpop.trf.xlu0 }
 0x5b9   : >> { %2612 = vmatprep.mubr.msk.bf16.mxu0 %vm1707_vm3, %v1705_v31 }
 0x5bc   : >> { %v1706_v11 = vpop.trf.xlu0 }
 0x5bd   : >> { %2613 = vmatmul.mubr.msk.bf16.gmra.mrb[12].mxu0 %vm1707_vm3, %v1706_v11 }
 0x678   : >> { %v2602_v57 = vpop.f32.mrb[0].mxu0 }
 0x679   : >> { %v1770_v22 = vpop.f32.mrb[1].mxu0  ;;  %v1841_v35 = vmul.f32 %v2602_v57, %v1837_v33 }
 0x67a   : >> { %v1839_v42 = vmul.f32 %v1837_v33, %v1770_v22  ;;  %v2603_v37 = vpop.f32.mrb[2].mxu0 }
 0x67b   : >> { %v1773_v62 = vpop.f32.mrb[3].mxu0  ;;  %v1842_v12 = vmul.f32 %v2603_v37, %v1837_v33  ;;  %v1863_v45 = vadd.f32 %v1859_v19, %v1841_v35 }
 0x67c   : >> { %v1840_v48 = vmul.f32 %v1837_v33, %v1773_v62  ;;  %v1861_v61 = vadd.f32 %v1859_v19, %v1839_v42 }
 0x67d   : >> { %v1864_v52 = vadd.f32 %v1859_v19, %v1842_v12 }
 0x67e   : >> { %1877 = vmax.xlane.f32.xlu0 %v1861_v61  ;;  %v1862_v18 = vadd.f32 %v1859_v19, %v1840_v48 }
 0x680   : >> { %1879 = vmax.xlane.f32.xlu1 %v1862_v18  ;;  %v2606_v17 = vpop.f32.mrb[4].mxu0 }
 0x681   : >> { %v1786_v30 = vpop.f32.mrb[5].mxu0  ;;  %v1845_v36 = vmul.f32 %v2606_v17, %v1837_v33 }
 0x682   : >> { %v2607_v53 = vpop.f32.mrb[6].mxu0  ;;  %v1843_v51 = vmul.f32 %v1837_v33, %v1786_v30 }
 0x683   : >> { %v1789_v49 = vpop.f32.mrb[7].mxu0  ;;  %v1846_v27 = vmul.f32 %v2607_v53, %v1837_v33  ;;  %v1867_v8 = vadd.f32 %v1859_v19, %v1845_v36 }
 0x684   : >> { %1881 = vmax.xlane.f32.xlu1 %v1863_v45  ;;  %v3573_v16 = vadd.f32 %v1859_v19, %v1843_v51  ;;  %v1844_v28 = vmul.f32 %v1837_v33, %v1789_v49 }
 0x685   : >> { %v1868_v6 = vadd.f32 %v1859_v19, %v1846_v27 }
 0x686   : >> { %v1866_v10 = vadd.f32 %v1859_v19, %v1844_v28 }
 0x688   : >> { %1883 = vmax.xlane.f32.xlu1 %v1864_v52  ;;  %v2610_v23 = vpop.f32.mrb[8].mxu0 }
 0x689   : >> { %v1802_v39 = vpop.f32.mrb[9].mxu0  ;;  %v1849_v43 = vmul.f32 %v2610_v23, %v1837_v33 }
 0x68a   : >> { %v2611_v9 = vpop.f32.mrb[10].mxu0  ;;  %v1847_v0 = vmul.f32 %v1837_v33, %v1802_v39 }
 0x68b   : >> { %v1805_v59 = vpop.f32.mrb[11].mxu0  ;;  %v1850_v47 = vmul.f32 %v2611_v9, %v1837_v33  ;;  %v3588_v7 = vadd.f32 %v1859_v19, %v1849_v43 }
 0x68c   : >> { %1885 = vmax.xlane.f32.xlu1 %v3573_v16  ;;  %v3579_v44 = vadd.f32 %v1859_v19, %v1847_v0  ;;  %v1848_v41 = vmul.f32 %v1837_v33, %v1805_v59 }
 0x68d   : >> { %v3591_v32 = vadd.f32 %v1859_v19, %v1850_v47 }
 0x68e   : >> { %v3585_v15 = vadd.f32 %v1859_v19, %v1848_v41 }
 0x690   : >> { %1887 = vmax.xlane.f32.xlu1 %v1866_v10  ;;  %v2614_v13 = vpop.f32.mrb[12].mxu0 }
 0x691   : >> { %v1818_v14 = vpop.f32.mrb[13].mxu0  ;;  %v1853_v50 = vmul.f32 %v2614_v13, %v1837_v33 }
 0x692   : >> { %v2615_v46 = vpop.f32.mrb[14].mxu0  ;;  %v1851_v2 = vmul.f32 %v1837_v33, %v1818_v14 }
 0x693   : >> { %v1821_v60 = vpop.f32.mrb[15].mxu0  ;;  %v1854_v58 = vmul.f32 %v2615_v46, %v1837_v33  ;;  %v3597_v34 = vadd.f32 %v1859_v19, %v1853_v50 }
 0x694   : >> { %v1852_v55 = vmul.f32 %v1837_v33, %v1821_v60  ;;  %1889 = vmax.xlane.f32.xlu1 %v1867_v8  ;;  %v3594_v3 = vadd.f32 %v1859_v19, %v1851_v2 }
 0x695   : >> { %v3581_v29 = vadd.f32 %v1859_v19, %v1854_v58  ;;  %v2850_v58 = vmov 0.0  }
 0x696   : >> { %v3576_v21 = vadd.f32 %v1859_v19, %v1852_v55  ;;  %2616 = vmatprep.subr.bf16.mxu1 %v2850_v58  ;;  %2632 = vmatprep.mubr.msk.bf16.mxu1 %vm2851_vm4, %v2850_v58 }
 0x698   : >> { %1891 = vmax.xlane.f32.xlu1 %v1868_v6  ;;  %1903 = vmax.xlane.f32.xlu0 %v3576_v21 }
 0x69c   : >> { %1893 = vmax.xlane.f32.xlu1 %v3579_v44  ;;  %1907 = vmax.xlane.f32.xlu0 %v3581_v29 }
 0x6a0   : >> { %1895 = vmax.xlane.f32.xlu1 %v3585_v15 }
 0x6a4   : >> { %1897 = vmax.xlane.f32.xlu1 %v3588_v7 }
 0x6a8   : >> { %1899 = vmax.xlane.f32.xlu1 %v3591_v32 }
 0x6ac   : >> { %1901 = vmax.xlane.f32.xlu1 %v3594_v3 }
 0x6b0   : >> { %1905 = vmax.xlane.f32.xlu1 %v3597_v34 }
 0x70b   : >> { %v1878_v56 = vpop.xlane.xlu0 %1877 }
 0x70c   : >> { %v1909_v1 = vsub.f32 %v1861_v61, %v1878_v56 }
 0x70d   : >> { %v1880_v20 = vpop.xlane.xlu1 %1879 }
 0x70e   : >> { %v1925_v40 = vmul.f32 1.442695, %v1909_v1  ;;  %v1910_v54 = vsub.f32 %v1862_v18, %v1880_v20 }
 0x710   : >> { %2748 = vpow2.f32 %v1925_v40  ;;  %v1927_v4 = vmul.f32 1.442695, %v1910_v54 }
 0x711   : >> { %v1882_v24 = vpop.xlane.xlu1 %1881 }
 0x712   : >> { %2750 = vpow2.f32 %v1927_v4  ;;  %v1911_v31 = vsub.f32 %v1863_v45, %v1882_v24 }
 0x714   : >> { %v1929_v11 = vmul.f32 1.442695, %v1911_v31 }
 0x715   : >> { %v1884_v38 = vpop.xlane.xlu1 %1883 }
 0x716   : >> { %2752 = vpow2.f32 %v1929_v11  ;;  %v1912_v26 = vsub.f32 %v1864_v52, %v1884_v38 }
 0x718   : >> { %v1931_v25 = vmul.f32 1.442695, %v1912_v26 }
 0x719   : >> { %v1886_v5 = vpop.xlane.xlu1 %1885 }
 0x71a   : >> { %v3600_v33 = vpop.eup %2748  ;;  %2754 = vpow2.f32 %v1931_v25  ;;  %v1913_v57 = vsub.f32 %v3573_v16, %v1886_v5 }
 0x71b   : >> { %1957 = vadd.xlane.f32.xlu1 %v3600_v33 }
 0x71c   : >> { %v3604_v63 = vpop.eup %2750  ;;  %v1933_v19 = vmul.f32 1.442695, %v1913_v57 }
 0x71d   : >> { %v1888_v22 = vpop.xlane.xlu1 %1887  ;;  %1959 = vadd.xlane.f32.xlu0 %v3604_v63 }
 0x71e   : >> { %2756 = vpow2.f32 %v1933_v19  ;;  %v1914_v42 = vsub.f32 %v1866_v10, %v1888_v22 }
 0x720   : >> { %v3607_v37 = vpop.eup %2752  ;;  %v1935_v62 = vmul.f32 1.442695, %v1914_v42 }
 0x721   : >> { %v1890_v48 = vpop.xlane.xlu1 %1889  ;;  %1961 = vadd.xlane.f32.xlu1 %v3607_v37 }
 0x722   : >> { %2758 = vpow2.f32 %v1935_v62  ;;  %v1915_v61 = vsub.f32 %v1867_v8, %v1890_v48 }
 0x724   : >> { %v3610_v35 = vpop.eup %2754  ;;  %v1937_v18 = vmul.f32 1.442695, %v1915_v61 }
 0x725   : >> { %v1892_v17 = vpop.xlane.xlu1 %1891  ;;  %1963 = vadd.xlane.f32.xlu0 %v3610_v35  ;;  %v1904_v28 = vpop.xlane.xlu0 %1903 }
 0x726   : >> { %2760 = vpow2.f32 %v1937_v18  ;;  %v1916_v30 = vsub.f32 %v1868_v6, %v1892_v17  ;;  %v1922_v14 = vsub.f32 %v3576_v21, %v1904_v28 }
 0x728   : >> { %v3613_v12 = vpop.eup %2756  ;;  %v1939_v45 = vmul.f32 1.442695, %v1916_v30  ;;  %v1951_v55 = vmul.f32 1.442695, %v1922_v14 }
 0x729   : >> { %v1894_v53 = vpop.xlane.xlu1 %1893  ;;  %1965 = vadd.xlane.f32.xlu1 %v3613_v12  ;;  %v1908_v46 = vpop.xlane.xlu0 %1907 }
 0x72a   : >> { %2762 = vpow2.f32 %v1939_v45  ;;  %v1917_v49 = vsub.f32 %v3579_v44, %v1894_v53  ;;  %v1924_v6 = vsub.f32 %v3581_v29, %v1908_v46 }
 0x72c   : >> { %v3617_v51 = vpop.eup %2758  ;;  %v1941_v52 = vmul.f32 1.442695, %v1917_v49 }
 0x72d   : >> { %v1896_v16 = vpop.xlane.xlu1 %1895  ;;  %1967 = vadd.xlane.f32.xlu0 %v3617_v51 }
 0x72e   : >> { %2764 = vpow2.f32 %v1941_v52  ;;  %v1918_v23 = vsub.f32 %v3585_v15, %v1896_v16  ;;  %v1955_v15 = vmul.f32 1.442695, %v1924_v6 }
 0x730   : >> { %v3621_v39 = vpop.eup %2760  ;;  %v1943_v9 = vmul.f32 1.442695, %v1918_v23 }
 0x731   : >> { %v1898_v59 = vpop.xlane.xlu1 %1897  ;;  %1969 = vadd.xlane.f32.xlu1 %v3621_v39 }
 0x732   : >> { %2766 = vpow2.f32 %v1943_v9  ;;  %v1919_v36 = vsub.f32 %v3588_v7, %v1898_v59 }
 0x734   : >> { %v3625_v10 = vpop.eup %2762  ;;  %v1945_v13 = vmul.f32 1.442695, %v1919_v36 }
 0x735   : >> { %v1900_v27 = vpop.xlane.xlu1 %1899  ;;  %1971 = vadd.xlane.f32.xlu0 %v3625_v10 }
 0x736   : >> { %2768 = vpow2.f32 %v1945_v13  ;;  %v1920_v8 = vsub.f32 %v3591_v32, %v1900_v27 }
 0x738   : >> { %v3630_v60 = vpop.eup %2764  ;;  %v1947_v0 = vmul.f32 1.442695, %v1920_v8 }
 0x739   : >> { %v1902_v44 = vpop.xlane.xlu1 %1901  ;;  %1973 = vadd.xlane.f32.xlu1 %v3630_v60 }
 0x73a   : >> { %2770 = vpow2.f32 %v1947_v0  ;;  %v1921_v21 = vsub.f32 %v3594_v3, %v1902_v44 }
 0x73b   : >> { %2772 = vpow2.f32 %v1951_v55 }
 0x73c   : >> { %v3636_v41 = vpop.eup %2766  ;;  %v1949_v43 = vmul.f32 1.442695, %v1921_v21 }
 0x73d   : >> { %v1906_v47 = vpop.xlane.xlu1 %1905  ;;  %1975 = vadd.xlane.f32.xlu0 %v3636_v41 }
 0x73e   : >> { %2774 = vpow2.f32 %v1949_v43  ;;  %v1923_v7 = vsub.f32 %v3597_v34, %v1906_v47 }
 0x73f   : >> { %2776 = vpow2.f32 %v1955_v15 }
 0x740   : >> { %v3640_v2 = vpop.eup %2768  ;;  %v1953_v29 = vmul.f32 1.442695, %v1923_v7 }
 0x741   : >> { %1977 = vadd.xlane.f32.xlu1 %v3640_v2 }
 0x742   : >> { %2778 = vpow2.f32 %v1953_v29 }
 0x744   : >> { %v3643_v32 = vpop.eup %2770 }
 0x745   : >> { %1979 = vadd.xlane.f32.xlu0 %v3643_v32  ;;  %v3646_v3 = vpop.eup %2772 }
 0x748   : >> { %v3648_v50 = vpop.eup %2774 }
 0x749   : >> { %1981 = vadd.xlane.f32.xlu1 %v3648_v50  ;;  %1983 = vadd.xlane.f32.xlu0 %v3646_v3  ;;  %v3652_v34 = vpop.eup %2776 }
 0x74c   : >> { %v3654_v56 = vpop.eup %2778 }
 0x74d   : >> { %1985 = vadd.xlane.f32.xlu1 %v3654_v56  ;;  %1987 = vadd.xlane.f32.xlu0 %v3652_v34 }
 0x7a8   : >> { %v1958_v1 = vpop.xlane.xlu1 %1957 }
 0x7a9   : >> { %2780 = vrcp.f32 %v1958_v1 }
 0x7aa   : >> { %v1960_v20 = vpop.xlane.xlu0 %1959 }
 0x7ab   : >> { %2782 = vrcp.f32 %v1960_v20 }
 0x7ae   : >> { %v1962_v40 = vpop.xlane.xlu1 %1961 }
 0x7af   : >> { %2784 = vrcp.f32 %v1962_v40 }
 0x7b2   : >> { %v1964_v54 = vpop.xlane.xlu0 %1963 }
 0x7b3   : >> { %v2781_v4 = vpop.eup %2780  ;;  %2786 = vrcp.f32 %v1964_v54  ;;  %v2083_v54 = vld [vmem:[%s3793_s12 + $0x8] sm:$0xff] (%p1676_p4) }
 0x7b4   : >> { %v2005_v11 = vmul.f32 %v2781_v4, %v3600_v33  ;;  %v2079_v4 = vld [vmem:[%s3792_s11 + $0x8] sm:$0xff] (%p1676_p4) }
 0x7b5   : >> { %v2783_v24 = vpop.eup %2782 }
 0x7b6   : >> { %v1966_v31 = vpop.xlane.xlu1 %1965  ;;  %v2006_v38 = vmul.f32 %v2783_v24, %v3604_v63  ;;  %v2081_v24 = vld [vmem:[%s3792_s11 + $0x18] sm:$0xff] (%p1676_p4) }
 0x7b7   : >> { %2788 = vrcp.f32 %v1966_v31  ;;  %v2080_v31 = vld [vmem:[%s3792_s11 + $0x10] sm:$0xff] (%p1676_p4) }
 0x7b8   : >> { %v2022_v26 = vpack.c.bf16 %v2006_v38, %v2005_v11  ;;  %v2085_v11 = vld [vmem:[%s3793_s12 + $0x18] sm:$0xff] (%p1676_p4)  ;;  %v2084_v38 = vld [vmem:[%s3793_s12 + $0x10] sm:$0xff] (%p1676_p4) }
 0x7b9   : >> { %v2785_v5 = vpop.eup %2784 }
 0x7ba   : >> { %2617 = vmatpush3.bf16.xpose.msra.mxu1 %v2022_v26  ;;  %v1968_v25 = vpop.xlane.xlu0 %1967  ;;  %v2007_v22 = vmul.f32 %v2785_v5, %v3607_v37  ;;  %v2175_v26 = vld [vmem:[%s3795_s14 + $0x8] sm:$0xff] (%p1676_p4)  ;;  %v2177_v5 = vld [vmem:[%s3795_s14 + $0x18] sm:$0xff] (%p1676_p4) }
 0x7bb   : >> { %2790 = vrcp.f32 %v1968_v25  ;;  %2618 = vmatprep.subr.bf16.mxu1 %v2850_v58  ;;  %v2174_v25 = vld [vmem:[%s3795_s14] sm:$0xff] (%p1676_p4) }
 0x7bd   : >> { %v2787_v57 = vpop.eup %2786 }
 0x7be   : >> { %v1970_v19 = vpop.xlane.xlu1 %1969  ;;  %v2008_v42 = vmul.f32 %v2787_v57, %v3610_v35  ;;  %v2176_v57 = vld [vmem:[%s3795_s14 + $0x10] sm:$0xff] (%p1676_p4) }
 0x7bf   : >> { %2792 = vrcp.f32 %v1970_v19  ;;  %v2814_v19 = vld [vmem:[%s3794_s13] sm:$0xff] (%p1676_p4)  }
 0x7c0   : >> { %v2023_v62 = vpack.c.bf16 %v2008_v42, %v2007_v22  ;;  %2640 = vmatprep.mubr.msk.bf16.mxu0 (%p1676_p4), %vm936_vm1, %v2814_v19 }
 0x7c1   : >> { %v2789_v48 = vpop.eup %2788 }
 0x7c2   : >> { %2619 = vmatpush3.bf16.xpose.msra.mxu1 %v2023_v62  ;;  %v1972_v33 = vpop.xlane.xlu0 %1971  ;;  %v2009_v18 = vmul.f32 %v2789_v48, %v3613_v12  ;;  %v2274_v62 = vld [vmem:[%s3797_s16 + $0x8] sm:$0xff] (%p1676_p4) }
 0x7c3   : >> { %2794 = vrcp.f32 %v1972_v33  ;;  %2620 = vmatprep.subr.bf16.mxu1 %v2850_v58  ;;  %v2273_v33 = vld [vmem:[%s3797_s16] sm:$0xff] (%p1676_p4) }
 0x7c5   : >> { %v2791_v63 = vpop.eup %2790 }
 0x7c6   : >> { %v1974_v61 = vpop.xlane.xlu1 %1973  ;;  %v2010_v17 = vmul.f32 %v2791_v63, %v3617_v51 }
 0x7c7   : >> { %2796 = vrcp.f32 %v1974_v61  ;;  %v2276_v61 = vld [vmem:[%s3797_s16 + $0x18] sm:$0xff] (%p1676_p4) }
 0x7c8   : >> { %v2024_v30 = vpack.c.bf16 %v2010_v17, %v2009_v18  ;;  %v2275_v18 = vld [vmem:[%s3797_s16 + $0x10] sm:$0xff] (%p1676_p4) }
 0x7c9   : >> { %v2793_v45 = vpop.eup %2792 }
 0x7ca   : >> { %2621 = vmatpush3.bf16.xpose.msra.mxu1 %v2024_v30  ;;  %v1976_v37 = vpop.xlane.xlu0 %1975  ;;  %v2011_v49 = vmul.f32 %v2793_v45, %v3621_v39 }
 0x7cb   : >> { %2798 = vrcp.f32 %v1976_v37  ;;  %2622 = vmatprep.subr.bf16.mxu1 %v2850_v58 }
 0x7cd   : >> { %v2795_v35 = vpop.eup %2794 }
 0x7ce   : >> { %v1978_v53 = vpop.xlane.xlu1 %1977  ;;  %v2012_v52 = vmul.f32 %v2795_v35, %v3625_v10 }
 0x7cf   : >> { %2800 = vrcp.f32 %v1978_v53 }
 0x7d0   : >> { %v2025_v16 = vpack.c.bf16 %v2012_v52, %v2011_v49 }
 0x7d1   : >> { %v2797_v23 = vpop.eup %2796 }
 0x7d2   : >> { %2623 = vmatpush3.bf16.xpose.msra.mxu1 %v2025_v16  ;;  %v1980_v12 = vpop.xlane.xlu0 %1979  ;;  %v2013_v59 = vmul.f32 %v2797_v23, %v3630_v60 }
 0x7d3   : >> { %2802 = vrcp.f32 %v1980_v12  ;;  %2624 = vmatprep.subr.bf16.mxu1 %v2850_v58 }
 0x7d5   : >> { %v2799_v51 = vpop.eup %2798 }
 0x7d6   : >> { %v1982_v28 = vpop.xlane.xlu1 %1981  ;;  %v1984_v9 = vpop.xlane.xlu0 %1983  ;;  %v2014_v36 = vmul.f32 %v2799_v51, %v3636_v41 }
 0x7d7   : >> { %2804 = vrcp.f32 %v1982_v28 }
 0x7d8   : >> { %2806 = vrcp.f32 %v1984_v9  ;;  %v2026_v39 = vpack.c.bf16 %v2014_v36, %v2013_v59 }
 0x7d9   : >> { %v2801_v10 = vpop.eup %2800 }
 0x7da   : >> { %2625 = vmatpush3.bf16.xpose.msra.mxu1 %v2026_v39  ;;  %v1986_v13 = vpop.xlane.xlu1 %1985  ;;  %v1988_v14 = vpop.xlane.xlu0 %1987  ;;  %v2015_v46 = vmul.f32 %v2801_v10, %v3640_v2  ;;  %v2503_v2 = vld [vmem:[%s3558_s23 + $0x40] sm:$0xff] }
 0x7db   : >> { %2626 = vmatprep.subr.bf16.mxu1 %v2850_v58  ;;  %2808 = vrcp.f32 %v1986_v13  ;;  %v2021_v29 = vpack.c.bf16 %v2503_v2, %v2503_v2 }
 0x7dc   : >> { %2810 = vrcp.f32 %v1988_v14 }
 0x7dd   : >> { %v2803_v27 = vpop.eup %2802 }
 0x7de   : >> { %v2016_v8 = vmul.f32 %v2803_v27, %v3643_v32  ;;  %v2071_v32 = vld [vmem:[%s2070_s20] sm:$0xff] }
 0x7e0   : >> { %v2027_v0 = vpack.c.bf16 %v2016_v8, %v2015_v46 }
 0x7e1   : >> { %v2805_v60 = vpop.eup %2804 }
 0x7e2   : >> { %v2807_v55 = vpop.eup %2806  ;;  %2627 = vmatpush3.bf16.xpose.msra.mxu1 %v2027_v0  ;;  %v2017_v6 = vmul.f32 %v2805_v60, %v3648_v50 }
 0x7e3   : >> { %2628 = vmatprep.subr.bf16.mxu1 %v2850_v58  ;;  %v2018_v44 = vmul.f32 %v2807_v55, %v3646_v3 }
 0x7e5   : >> { %v2809_v21 = vpop.eup %2808  ;;  %v2028_v41 = vpack.c.bf16 %v2018_v44, %v2017_v6 }
 0x7e6   : >> { %v2811_v43 = vpop.eup %2810  ;;  %v2019_v15 = vmul.f32 %v2809_v21, %v3654_v56  ;;  %v2078_v56 = vld [vmem:[%s3792_s11] sm:$0xff] (%p1676_p4) }
 0x7e7   : >> { %v2020_v47 = vmul.f32 %v2811_v43, %v3652_v34  ;;  %v2082_v34 = vld [vmem:[%s3793_s12] sm:$0xff] (%p1676_p4) }
 0x7e9   : >> { %v2029_v7 = vpack.c.bf16 %v2020_v47, %v2019_v15 }
 0x7ea   : >> { %2629 = vmatpush3.bf16.xpose.msra.mxu1 %v2028_v41 }
 0x7eb   : >> { %2630 = vmatprep.subr.bf16.mxu1 %v2850_v58  ;;  %v3821_v58 = vmov (%p1676_p4), 0  }
 0x7ec   : > { %2813 = vset.pattern.permute.xlu1 (%p1676_p4), %v3821_v58  ;;  %2812 = vset.pattern.permute.xlu0 (%p1676_p4), %v3821_v58 }
 0x7ed   : > { %2146 = vperm.xlu1 (%p1676_p4), %2813, %v2082_v34   ;;  %2122 = vperm.xlu0 (%p1676_p4), %2812, %v2078_v56  }
 0x7f1   : > { %2151 = vperm.xlu1 (%p1676_p4), %2813, %v2083_v54   ;;  %2127 = vperm.xlu0 (%p1676_p4), %2812, %v2079_v4  }
 0x7f2   : >> { %2631 = vmatpush3.bf16.xpose.msra.mxu1 %v2029_v7 }
 0x7f5   : > { %2137 = vperm.xlu1 (%p1676_p4), %2813, %v2081_v24   ;;  %2132 = vperm.xlu0 (%p1676_p4), %2812, %v2080_v31  }
 0x7f9   : >> { %2633 = vmatmul.mubr.bf16.vlgmr.msra.gmra.mrb[0].mxu1 %v2021_v29  ;;  %2161 = vperm.xlu1 (%p1676_p4), %2813, %v2085_v11  }
 0x7fa   : > { %2156 = vperm.xlu0 (%p1676_p4), %2812, %v2084_v38  }
 0x7fd   : > { %2185 = vperm.xlu1 (%p1676_p4), %2813, %v2175_v26  }
 0x7fe   : > { %2180 = vperm.xlu0 (%p1676_p4), %2812, %v2174_v25   ;;  %v2815_v25 = vld [vmem:[%s3794_s13 + $0x8] sm:$0xff] (%p1676_p4)  }
 0x801   : > { %2195 = vperm.xlu1 (%p1676_p4), %2813, %v2177_v5   ;;  %v2816_v5 = vld [vmem:[%s3796_s15] sm:$0xff] (%p1676_p4)  }
 0x802   : > { %2190 = vperm.xlu0 (%p1676_p4), %2812, %v2176_v57   ;;  %2648 = vmatprep.mubr.msk.bf16.mxu1 (%p1676_p4), %vm936_vm1, %v2816_v5 }
 0x805   : > { %2284 = vperm.xlu1 (%p1676_p4), %2813, %v2274_v62  }
 0x806   : > { %2279 = vperm.xlu0 (%p1676_p4), %2812, %v2273_v33  }
 0x809   : > { %2294 = vperm.xlu1 (%p1676_p4), %2813, %v2276_v61  }
 0x80a   : > { %2289 = vperm.xlu0 (%p1676_p4), %2812, %v2275_v18  }
 0x86c   : > { %v2147_v15 = vpop.permute.xlu1 (%p1676_p4), %2146  ;;  %v2123_v47 = vpop.permute.xlu0 (%p1676_p4), %2122 }
 0x870   : > { %v2152_v29 = vpop.permute.xlu1 (%p1676_p4), %2151 }
 0x874   : > { %v2138_v58 = vpop.permute.xlu1 (%p1676_p4), %2137 }
 0x878   : > { %v2162_v24 = vpop.permute.xlu1 (%p1676_p4), %2161 }
 0x87c   : > { %v2186_v19 = vpop.permute.xlu1 (%p1676_p4), %2185 }
 0x880   : > { %v2196_v18 = vpop.permute.xlu1 (%p1676_p4), %2195 }
 0x8c9   : > { %1678 = sbr.rel (!%p1676_p4) target bundleno = 1329 (0x531), region = 137 }
 0x8cc   : >> { %v2064_v50 = vpop.f32.mrb[0].mxu1 }
 0x8cd   : >> { %v2072_v3 = vadd.f32 %v2071_v32, %v2064_v50  ;;  %v2634_v1 = vpop.f32.mrb[1].mxu1  ;;  %v2128_v32 = vpop.permute.xlu0 (%p1676_p4), %2127 }
 0x8ce   : >> { %v2067_v20 = vpop.f32.mrb[2].mxu1 }
 0x8cf   : >> { %2073 = vst [vmem:[%s2070_s20] sm:$0xff] %v2072_v3  ;;  %v2635_v40 = vpop.f32.mrb[3].mxu1 }
 0x8d1   : > { %v2133_v34 = vpop.permute.xlu0 %2132 }
 0x8d5   : > { %v2157_v31 = vpop.permute.xlu0 %2156 }
 0x8d6   : > { %v3729_v22 = vld [vmem:[#allocation3] sm:$0xff]  ;;  %v3731_v42 = vld [vmem:[#allocation3 + $0x8] sm:$0xff]  ;;  %v3742_v63 = vld [vmem:[#allocation3 + $0x10] sm:$0xff] }
 0x8d7   : > { %v2086_v48 = vadd.f32 %v3731_v42, %v3729_v22  ;;  %v3751_v30 = vld [vmem:[#allocation3 + $0x18] sm:$0xff] }
 0x8d9   : > { %v2087_v17 = vadd.f32 %v2086_v48, %v3742_v63  ;;  %v2181_v57 = vpop.permute.xlu0 %2180 }
 0x8db   : > { %v2088_v37 = vadd.f32 %v2087_v17, %v3751_v30 }
 0x8dd   : > { %v2089_v45 = vrot.slane %v2088_v37, 4  ;;  %v2191_v62 = vpop.permute.xlu0 %2190 }
 0x8df   : > { %v2090_v35 = vadd.f32 %v2089_v45, %v2088_v37 }
 0x8e1   : > { %v2091_v53 = vrot.slane %v2090_v35, 2 }
 0x8e3   : > { %v2092_v49 = vadd.f32 %v2091_v53, %v2090_v35 }
 0x8e5   : > { %v2093_v52 = vrot.slane %v2092_v49, 1 }
 0x8e7   : > { %v2094_v16 = vadd.f32 %v2093_v52, %v2092_v49 }
 0x8e9   : > { %v2095_v12 = vmul.f32 0.03125, %v2094_v16 }
 0x8eb   : > { %v2096_v23 = vsub.f32 %v3729_v22, %v2095_v12  ;;  %v2097_v51 = vsub.f32 %v3731_v42, %v2095_v12  ;;  %v2098_v28 = vsub.f32 %v3742_v63, %v2095_v12  ;;  %v2099_v36 = vsub.f32 %v3751_v30, %v2095_v12 }
 0x8ed   : > { %v2100_v9 = vmul.f32 %v2096_v23, %v2096_v23  ;;  %v2101_v59 = vmul.f32 %v2097_v51, %v2097_v51  ;;  %v2102_v39 = vmul.f32 %v2098_v28, %v2098_v28  ;;  %v2103_v13 = vmul.f32 %v2099_v36, %v2099_v36 }
 0x8ef   : > { %v2104_v10 = vadd.f32 %v2101_v59, %v2100_v9  ;;  %v2280_v9 = vpop.permute.xlu0 %2279  ;;  %v2285_v59 = vpop.permute.xlu1 %2284 }
 0x8f1   : > { %v2105_v14 = vadd.f32 %v2104_v10, %v2102_v39 }
 0x8f3   : > { %v2106_v27 = vadd.f32 %v2105_v14, %v2103_v13  ;;  %v2295_v14 = vpop.permute.xlu1 %2294 }
 0x8f5   : > { %v2107_v46 = vrot.slane %v2106_v27, 4 }
 0x8f7   : > { %v2108_v8 = vadd.f32 %v2107_v46, %v2106_v27 }
 0x8f9   : > { %v2109_v0 = vrot.slane %v2108_v8, 2 }
 0x8fb   : > { %v2110_v60 = vadd.f32 %v2109_v0, %v2108_v8 }
 0x8fd   : > { %v2111_v55 = vrot.slane %v2110_v60, 1 }
 0x8ff   : > { %v2112_v6 = vadd.f32 %v2111_v55, %v2110_v60 }
 0x901   : > { %v2113_v44 = vmul.f32 0.03125, %v2112_v6 }
 0x903   : > { %v2114_v21 = vadd.f32 1e-05, %v2113_v44 }
 0x905   : > { %2818 = vrsqrt.f32 %v2114_v21 }
 0x90f   : > { %v2819_v41 = vpop.eup %2818 }
 0x910   : > { %v2116_v43 = vmul.f32 %v2819_v41, %v2096_v23  ;;  %v2117_v7 = vmul.f32 %v2819_v41, %v2097_v51  ;;  %v2119_v20 = vmul.f32 %v2819_v41, %v2099_v36  ;;  %v2118_v40 = vmul.f32 %v2819_v41, %v2098_v28  ;;  %v2817_v28 = vld [vmem:[%s3796_s15 + $0x8] sm:$0xff]   ;;  %v2290_v36 = vpop.permute.xlu0 %2289 }
 0x912   : > { %v2140_v2 = vmul.f32 %v2123_v47, %v2116_v43  ;;  %v2141_v50 = vmul.f32 %v2128_v32, %v2117_v7  ;;  %v2143_v54 = vmul.f32 %v2138_v58, %v2119_v20  ;;  %v2142_v4 = vmul.f32 %v2133_v34, %v2118_v40 }
 0x914   : > { %v2164_v3 = vadd.f32 %v2147_v15, %v2140_v2  ;;  %v2165_v1 = vadd.f32 %v2152_v29, %v2141_v50  ;;  %v2167_v11 = vadd.f32 %v2162_v24, %v2143_v54  ;;  %v2166_v38 = vadd.f32 %v2157_v31, %v2142_v4 }
 0x916   : > { %v2172_v56 = vpack.c.bf16 %v2165_v1, %v2164_v3  ;;  %v2173_v26 = vpack.c.bf16 %v2167_v11, %v2166_v38 }
 0x918   : > { %2636 = vmatprep.subr.bf16.mxu0 %v2172_v56 }
 0x919   : > { %2637 = vmatpush3.bf16.msra.mxu0 %v2172_v56 }
 0x91a   : > { %2638 = vmatprep.subr.bf16.mxu0 %v2173_v26 }
 0x91d   : > { %2639 = vmatpush3.bf16.msra.mxu0 %v2173_v26 }
 0x920   : > { %2641 = vmatmul.mubr.msk.bf16.vlgmr.msra.gmra.mrb[0].mxu0 %vm936_vm1, %v2815_v25 }
 0x9f3   : > { %v2642_v33 = vpop.f32.mrb[0].mxu0 }
 0x9f4   : > { %v2257_v48 = vadd.f32 %v2642_v33, %v2191_v62  ;;  %v2248_v61 = vpop.f32.mrb[1].mxu0 }
 0x9f5   : > { %v2249_v17 = vadd.f32 %v2248_v61, %v2181_v57  ;;  %v2643_v37 = vpop.f32.mrb[2].mxu0 }
 0x9f6   : > { %v2260_v45 = vadd.f32 %v2643_v37, %v2196_v18  ;;  %v2251_v35 = vpop.f32.mrb[3].mxu0  ;;  %v2265_v49 = vmax.f32 %v2257_v48, 0.0 }
 0x9f7   : > { %v2252_v53 = vadd.f32 %v2251_v35, %v2186_v19  ;;  %v2263_v16 = vmax.f32 %v2249_v17, 0.0 }
 0x9f8   : > { %v2266_v52 = vmax.f32 %v2260_v45, 0.0 }
 0x9f9   : > { %v2264_v12 = vmax.f32 %v2252_v53, 0.0 }
 0x9fa   : > { %v2272_v23 = vpack.c.bf16 %v2266_v52, %v2265_v49 }
 0x9fb   : > { %v2271_v51 = vpack.c.bf16 %v2264_v12, %v2263_v16 }
 0x9fd   : > { %2644 = vmatprep.subr.bf16.mxu1 %v2271_v51 }
 0x9fe   : > { %2645 = vmatpush3.bf16.msra.mxu1 %v2271_v51 }
 0x9ff   : > { %2646 = vmatprep.subr.bf16.mxu1 %v2272_v23 }
 0xa02   : > { %2647 = vmatpush3.bf16.msra.mxu1 %v2272_v23 }
 0xa05   : > { %2649 = vmatmul.mubr.msk.bf16.vlgmr.msra.gmra.mrb[0].mxu1 %vm936_vm1, %v2817_v28 }
 0xad8   : > { %v2650_v39 = vpop.f32.mrb[0].mxu1 }
 0xad9   : > { %v2356_v10 = vadd.f32 %v2650_v39, %v2290_v36  ;;  %v2347_v13 = vpop.f32.mrb[1].mxu1 }
 0xada   : > { %v2348_v27 = vadd.f32 %v2347_v13, %v2280_v9  ;;  %v2651_v46 = vpop.f32.mrb[2].mxu1 }
 0xadb   : > { %v2364_v8 = vadd.f32 %v2356_v10, %v3742_v63  ;;  %v2359_v0 = vadd.f32 %v2651_v46, %v2295_v14  ;;  %v2350_v60 = vpop.f32.mrb[3].mxu1 }
 0xadc   : > { %v2362_v55 = vadd.f32 %v2348_v27, %v3729_v22  ;;  %v2351_v6 = vadd.f32 %v2350_v60, %v2285_v59 }
 0xadd   : > { %2368 = vst [vmem:[%s2976_s18 + $0x10] sm:$0xff] %v2364_v8  ;;  %v2365_v44 = vadd.f32 %v2359_v0, %v3751_v30 }
 0xade   : > { %2366 = vst [vmem:[%s2976_s18] sm:$0xff] %v2362_v55  ;;  %v2363_v21 = vadd.f32 %v2351_v6, %v3731_v42 }
 0xadf   : > { %2369 = vst [vmem:[%s2976_s18 + $0x18] sm:$0xff] %v2365_v44 }
 0xae0   : > { %2367 = vst [vmem:[%s2976_s18 + $0x8] sm:$0xff] %v2363_v21 }
 0xae1 PF: > { %s27_s24 = sadd.s32 1, %s2830_s24  }
 0xae2   : > { %p24_p5 = scmp.ge.s32.totalorder %s27_s24, 4  }
 0xae4   :  { %26 = sbr.rel (!%p24_p5) target bundleno = 3 (0x3), region = 148 }

</bundles_post_ra>
